<compile_context>
chip_gen: v6e
topology: v6e:2x2x1
jax: 0.10.0
libtpu: 0.0.40
codegen_flags: <defaults>
</compile_context>

<pallas_src>
import math

import jax
import jax.numpy as jnp
import numpy as np
from jax.experimental import pallas as pl
from jax.experimental.pallas import tpu as pltpu  # noqa: F401  (TPU backend assumed)

# ----------------------------- configuration --------------------------------
NUM_EMBEDDINGS = 100   # base_conf.num_embeddings
VOCAB_PAD = 128        # vocab padded to a full lane width
EMBED_DIM = 32         # base_conf.embedding_dim  (d_model)
HIDDEN = 64            # base_conf.hidden_size    (dim_feedforward)
SEQ_LEN = 8            # base_conf.sentence_length
NUM_HEADS = 4          # attn_conf.num_heads
NUM_LAYERS = 2         # attn_conf.num_layers
FEATURE = 32           # attn_conf.feature_size
BATCH = 2
LN_EPS = 1e-5
HEAD_DIM = EMBED_DIM // NUM_HEADS
BS = BATCH * SEQ_LEN          # flattened (batch*seq) rows for all projections
HB = NUM_HEADS * BS           # rows of packed per-(head,batch,seq) layout = 64
QKVH = 3 * HEAD_DIM           # per-head grouped q|k|v width = 24
LANES = 128
NEG_INF = -1e30


# --------------------------- weight-slab layout ------------------------------
def _build_slab_layout():
    layout = {}
    rows = 0

    def reg(name, r, c):
        nonlocal rows
        layout[name] = (rows, r, c)
        rows += -(-r // 8) * 8          # pad each tensor's rows to a multiple of 8

    reg('emb', VOCAB_PAD, EMBED_DIM)
    reg('pos', BS, EMBED_DIM)
    for l in range(NUM_LAYERS):
        reg(f'in_wT{l}', EMBED_DIM, 3 * EMBED_DIM)
        reg(f'in_b{l}', 1, 3 * EMBED_DIM)
        reg(f'out_wT{l}', EMBED_DIM, EMBED_DIM)
        reg(f'out_b{l}', 1, EMBED_DIM)
        reg(f'ln1_w{l}', 1, EMBED_DIM)
        reg(f'ln1_b{l}', 1, EMBED_DIM)
        reg(f'w1T{l}', EMBED_DIM, HIDDEN)
        reg(f'b1{l}', 1, HIDDEN)
        reg(f'w2T{l}', HIDDEN, EMBED_DIM)
        reg(f'b2{l}', 1, EMBED_DIM)
        reg(f'ln2_w{l}', 1, EMBED_DIM)
        reg(f'ln2_b{l}', 1, EMBED_DIM)
    reg('wqkvT', EMBED_DIM, 3 * FEATURE)
    reg('bqkv', 1, 3 * FEATURE)
    reg('wlT', FEATURE, LANES)          # final Linear, lane-padded to 128 cols
    reg('bl', 1, LANES)
    return layout, rows


SLAB_LAYOUT, SLAB_ROWS = _build_slab_layout()


# ----------------------------- shared math helpers ---------------------------
def _softmax_last(x):
    m = jnp.max(x, axis=-1, keepdims=True)
    e = jnp.exp(x - m)
    return e * pl.reciprocal(jnp.sum(e, axis=-1, keepdims=True))


def _softmax_last_ref(x):
    m = jnp.max(x, axis=-1, keepdims=True)
    e = jnp.exp(x - m)
    return e / jnp.sum(e, axis=-1, keepdims=True)


def _layernorm(x, w, b):
    mu = jnp.mean(x, axis=-1, keepdims=True)
    var = jnp.mean(jnp.square(x - mu), axis=-1, keepdims=True)
    return (x - mu) * jax.lax.rsqrt(var + LN_EPS) * w + b


def _blockdiag_mask(n, block):
    """(n, n) additive mask: 0 inside `block`-sized diagonal blocks, -1e30 outside."""
    shift = int(round(math.log2(block)))
    ri = jax.lax.shift_right_logical(
        jax.lax.broadcasted_iota(jnp.int32, (n, n), 0), shift)
    ci = jax.lax.shift_right_logical(
        jax.lax.broadcasted_iota(jnp.int32, (n, n), 1), shift)
    return jnp.where(ri == ci, 0.0, NEG_INF).astype(jnp.float32)


# --------------------- fused whole-network Pallas kernel ---------------------
def fused_kernel(tok_ref, slab_ref, o_ref):
    def W(name):
        off, r, c = SLAB_LAYOUT[name]
        return slab_ref[off:off + r, :c]            # static slice of the weight slab

    # ---- fused embedding lookup: one-hot (BS,128) @ (128,E) on the MXU -------
    tok = tok_ref[...]                                                  # (BS, 1) int32
    vocab_ids = jax.lax.broadcasted_iota(jnp.int32, (BS, VOCAB_PAD), 1)
    one_hot = (vocab_ids == tok).astype(jnp.float32)                    # (BS, 128)
    x = jnp.dot(one_hot, W('emb'), preferred_element_type=jnp.float32) + W('pos')

    # additive block-diagonal masks (computed once, reused every layer)
    head_mask = _blockdiag_mask(HB, SEQ_LEN)                             # (64, 64)
    batch_mask = _blockdiag_mask(BS, SEQ_LEN)                            # (16, 16)

    inv_sqrt_dh = 1.0 / math.sqrt(HEAD_DIM)
    dims_nt = (((1,), (1,)), ((), ()))       # contract last dims:  A @ B^T

    # ---- NUM_LAYERS x post-norm TransformerEncoderLayer (static unrolled) ----
    for l in range(NUM_LAYERS):
        # fused qkv projection; weight columns are per-head grouped on the host
        qkv = jnp.dot(x, W(f'in_wT{l}'),
                      preferred_element_type=jnp.float32) + W(f'in_b{l}')     # (16, 96)
        # pack all heads into rows: (B*S, H*(3*Dh)) -> (H*B*S, 3*Dh)
        qkvh = jnp.concatenate(
            [qkv[:, h * QKVH:(h + 1) * QKVH] for h in range(NUM_HEADS)], axis=0)  # (64, 24)
        qh = qkvh[:, 0:HEAD_DIM] * inv_sqrt_dh
        kh = qkvh[:, HEAD_DIM:2 * HEAD_DIM]
        vh = qkvh[:, 2 * HEAD_DIM:3 * HEAD_DIM]

        # block-diagonally masked attention over all (head, batch) pairs at once
        s = jax.lax.dot_general(qh, kh, dims_nt,
                                preferred_element_type=jnp.float32) + head_mask   # (64, 64)
        p = _softmax_last(s)
        oh = jnp.dot(p, vh, preferred_element_type=jnp.float32)                   # (64, 8)
        # unpack heads back to lanes: (H*B*S, Dh) -> (B*S, E)
        attn = jnp.concatenate(
            [oh[h * BS:(h + 1) * BS, :] for h in range(NUM_HEADS)], axis=1)       # (16, 32)
        attn = jnp.dot(attn, W(f'out_wT{l}'),
                       preferred_element_type=jnp.float32) + W(f'out_b{l}')

        # residual + LayerNorm1 (dropout is identity in eval)
        y = _layernorm(x + attn, W(f'ln1_w{l}'), W(f'ln1_b{l}'))

        # feed-forward: Linear(E->H) -> ReLU -> Linear(H->E)
        h = jnp.maximum(
            jnp.dot(y, W(f'w1T{l}'), preferred_element_type=jnp.float32) + W(f'b1{l}'), 0.0)
        h = jnp.dot(h, W(f'w2T{l}'), preferred_element_type=jnp.float32) + W(f'b2{l}')

        # residual + LayerNorm2
        x = _layernorm(y + h, W(f'ln2_w{l}'), W(f'ln2_b{l}'))

    # ---- single-head attention head (fused qkv) + seq max-pool + Linear ------
    qkv = jnp.dot(x, W('wqkvT'), preferred_element_type=jnp.float32) + W('bqkv')   # (16, 96)
    q = qkv[:, 0:FEATURE] * (FEATURE ** -0.5)
    k = qkv[:, FEATURE:2 * FEATURE]
    v = qkv[:, 2 * FEATURE:3 * FEATURE]
    sim = jax.lax.dot_general(q, k, dims_nt,
                              preferred_element_type=jnp.float32) + batch_mask     # (16, 16)
    a = _softmax_last(sim)
    out = jnp.dot(a, v, preferred_element_type=jnp.float32)                        # (16, 32)

    # permute(0,2,1) + max_pool1d over full length == per-batch max over the 8 seq rows
    pooled = jnp.concatenate(
        [jnp.max(out[b * SEQ_LEN:(b + 1) * SEQ_LEN, :], axis=0, keepdims=True)
         for b in range(BATCH)], axis=0)                                           # (B, 32)

    # lane-dense output: wl zero-padded to 128 columns; host slices [:, :2]
    o_ref[...] = jnp.dot(pooled, W('wlT'),
                         preferred_element_type=jnp.float32) + W('bl')             # (B, 128)


# --------------------------- host-side preparation ---------------------------
def prepare_params(params):
    """One-time host prep: transpose PyTorch-layout weights, fuse/permute the
    qkv projections and pack EVERYTHING into one lane-aligned (SLAB_ROWS,128)
    f32 slab (single DMA at kernel launch)."""
    slab = np.zeros((SLAB_ROWS, LANES), np.float32)

    def put(name, arr):
        off, r, c = SLAB_LAYOUT[name]
        slab[off:off + r, :c] = np.asarray(arr, np.float32).reshape(r, c)

    emb = np.zeros((VOCAB_PAD, EMBED_DIM), np.float32)
    emb[:NUM_EMBEDDINGS] = np.asarray(params['embedding'], np.float32)
    put('emb', emb)
    put('pos', np.tile(np.asarray(params['pos_embedding'], np.float32), (BATCH, 1)))

    # column permutation that groups the fused qkv projection output per head:
    # [q_h | k_h | v_h] for h = 0..H-1
    perm = np.concatenate([
        np.concatenate([np.arange(HEAD_DIM) + h * HEAD_DIM + t * EMBED_DIM
                        for t in range(3)])
        for h in range(NUM_HEADS)])

    for l, lp in enumerate(params['layers']):
        put(f'in_wT{l}', np.asarray(lp['in_w'], np.float32).T[:, perm])
        put(f'in_b{l}', np.asarray(lp['in_b'], np.float32)[:, perm])
        put(f'out_wT{l}', np.asarray(lp['out_w'], np.float32).T)
        put(f'out_b{l}', lp['out_b'])
        put(f'ln1_w{l}', lp['ln1_w'])
        put(f'ln1_b{l}', lp['ln1_b'])
        put(f'w1T{l}', np.asarray(lp['ffn_w1'], np.float32).T)
        put(f'b1{l}', lp['ffn_b1'])
        put(f'w2T{l}', np.asarray(lp['ffn_w2'], np.float32).T)
        put(f'b2{l}', lp['ffn_b2'])
        put(f'ln2_w{l}', lp['ln2_w'])
        put(f'ln2_b{l}', lp['ln2_b'])

    put('wqkvT', np.concatenate(
        [np.asarray(params[w], np.float32).T for w in ('wq', 'wk', 'wv')], axis=1))
    put('bqkv', np.concatenate(
        [np.asarray(params[b], np.float32) for b in ('bq', 'bk', 'bv')], axis=1))

    wl_pad = np.zeros((FEATURE, LANES), np.float32)
    wl_pad[:, :2] = np.asarray(params['wl'], np.float32).T
    put('wlT', wl_pad)
    bl_pad = np.zeros((1, LANES), np.float32)
    bl_pad[:, :2] = np.asarray(params['bl'], np.float32)
    put('bl', bl_pad)

    return jnp.asarray(slab)


@jax.jit
def _fused_call(tok2d, slab):
    # No grid: single kernel invocation; both operands are whole-array VMEM
    # blocks (default BlockSpecs).  Only a (B, 128) lane-dense logits block is
    # written back; the (B, 2) slice happens on the host side of the call.
    logits_padded = pl.pallas_call(
        fused_kernel,
        out_shape=jax.ShapeDtypeStruct((BATCH, LANES), jnp.float32),
    )(tok2d, slab)
    return logits_padded[:, :2]


def text_self_attention_forward(tokens, slab):
    tok2d = tokens.reshape(BS, 1).astype(jnp.int32)
    return _fused_call(tok2d, slab)


# ----------------------------- parameters ------------------------------------
def init_params(key):
    keys = iter(jax.random.split(key, 64))

    def dense(shape, scale=0.05):
        return jax.random.normal(next(keys), shape, jnp.float32) * scale

    params = {
        'embedding': dense((NUM_EMBEDDINGS, EMBED_DIM), 0.1),
        'pos_embedding': dense((SEQ_LEN, EMBED_DIM), 0.1),
        'layers': [],
    }
    for _ in range(NUM_LAYERS):
        params['layers'].append(dict(
            in_w=dense((3 * EMBED_DIM, EMBED_DIM)),
            in_b=dense((1, 3 * EMBED_DIM)),
            out_w=dense((EMBED_DIM, EMBED_DIM)),
            out_b=dense((1, EMBED_DIM)),
            ln1_w=jnp.ones((1, EMBED_DIM), jnp.float32),
            ln1_b=jnp.zeros((1, EMBED_DIM), jnp.float32),
            ffn_w1=dense((HIDDEN, EMBED_DIM)),
            ffn_b1=dense((1, HIDDEN)),
            ffn_w2=dense((EMBED_DIM, HIDDEN)),
            ffn_b2=dense((1, EMBED_DIM)),
            ln2_w=jnp.ones((1, EMBED_DIM), jnp.float32),
            ln2_b=jnp.zeros((1, EMBED_DIM), jnp.float32),
        ))
    params['wq'] = dense((FEATURE, EMBED_DIM)); params['bq'] = dense((1, FEATURE))
    params['wk'] = dense((FEATURE, EMBED_DIM)); params['bk'] = dense((1, FEATURE))
    params['wv'] = dense((FEATURE, EMBED_DIM)); params['bv'] = dense((1, FEATURE))
    params['wl'] = dense((2, FEATURE));         params['bl'] = dense((1, 2))
    return params


# ----------------------------- pure-JAX reference ----------------------------
def _ref_layer(x, lp):
    B, S, _ = x.shape
    qkv = jnp.einsum('bse,fe->bsf', x, lp['in_w']) + lp['in_b'][0]
    q, k, v = jnp.split(qkv, 3, axis=-1)
    q = q.reshape(B, S, NUM_HEADS, HEAD_DIM).transpose(0, 2, 1, 3)
    k = k.reshape(B, S, NUM_HEADS, HEAD_DIM).transpose(0, 2, 1, 3)
    v = v.reshape(B, S, NUM_HEADS, HEAD_DIM).transpose(0, 2, 1, 3)
    s = jnp.einsum('bhqd,bhkd->bhqk', q, k) / math.sqrt(HEAD_DIM)
    a = _softmax_last_ref(s)
    o = jnp.einsum('bhqk,bhkd->bhqd', a, v).transpose(0, 2, 1, 3).reshape(B, S, EMBED_DIM)
    o = jnp.einsum('bse,fe->bsf', o, lp['out_w']) + lp['out_b'][0]
    y = _layernorm(x + o, lp['ln1_w'][0], lp['ln1_b'][0])
    h = jax.nn.relu(jnp.einsum('bse,he->bsh', y, lp['ffn_w1']) + lp['ffn_b1'][0])
    h = jnp.einsum('bsh,eh->bse', h, lp['ffn_w2']) + lp['ffn_b2'][0]
    return _layernorm(y + h, lp['ln2_w'][0], lp['ln2_b'][0])


def reference_forward(tokens, params):
    x = params['embedding'][tokens] + params['pos_embedding'][jnp.arange(SEQ_LEN)]
    for lp in params['layers']:
        x = _ref_layer(x, lp)
    q = jnp.einsum('bse,fe->bsf', x, params['wq']) + params['bq'][0]
    k = jnp.einsum('bse,fe->bsf', x, params['wk']) + params['bk'][0]
    v = jnp.einsum('bse,fe->bsf', x, params['wv']) + params['bv'][0]
    sim = jnp.einsum('bid,bjd->bij', q, k) * (FEATURE ** -0.5)
    a = _softmax_last_ref(sim)
    out = jnp.einsum('bij,bjd->bid', a, v)
    pooled = jnp.max(out, axis=1)
    return pooled @ params['wl'].T + params['bl'][0]


# ----------------------------------- main -------------------------------------
if __name__ == "__main__":
    key = jax.random.PRNGKey(0)
    k_tok, k_par = jax.random.split(key)
    tokens = jax.random.randint(k_tok, (BATCH, SEQ_LEN), 0, NUM_EMBEDDINGS, dtype=jnp.int32)
    params = init_params(k_par)
    slab = prepare_params(params)

    logits = text_self_attention_forward(tokens, slab)
    logits = jax.block_until_ready(logits)

    ref = jax.block_until_ready(reference_forward(tokens, params))
    assert logits.shape == (BATCH, 2)
    np.testing.assert_allclose(np.asarray(logits), np.asarray(ref), rtol=1e-4, atol=1e-4)

    print("KERNEL_OK")
</pallas_src>

<mosaic_0001>
module attributes {stable_mosaic.version = 11 : i64} {
  func.func @fused_kernel(%arg0: memref<16x1xi32, #tpu.memory_space<vmem>>, %arg1: memref<672x128xf32, #tpu.memory_space<vmem>>, %arg2: memref<2x128xf32, #tpu.memory_space<vmem>>) attributes {dimension_semantics = [], scalar_prefetch = 0 : i64, scratch_operands = 0 : i64, tpu.core_type = #tpu.core_type<tc>} {
    %c0 = arith.constant 0 : index
    %c0_0 = arith.constant 0 : index
    %0 = vector.load %arg0[%c0, %c0_0] : memref<16x1xi32, #tpu.memory_space<vmem>>, vector<16x1xi32>
    %1 = tpu.iota {dimensions = array<i32: 1>} : vector<16x128xi32>
    %2 = vector.broadcast %0 : vector<16x1xi32> to vector<16x128xi32>
    %3 = arith.cmpi eq, %1, %2 : vector<16x128xi32>
    %4 = arith.extui %3 : vector<16x128xi1> to vector<16x128xi32>
    %5 = arith.sitofp %4 : vector<16x128xi32> to vector<16x128xf32>
    %c0_1 = arith.constant 0 : index
    %c0_2 = arith.constant 0 : index
    %6 = vector.load %arg1[%c0_1, %c0_2] : memref<672x128xf32, #tpu.memory_space<vmem>>, vector<128x32xf32>
    %cst = arith.constant dense<0.000000e+00> : vector<16x32xf32>
    %7 = tpu.matmul %5, %6, %cst {dimension_numbers = #tpu.dot_dimension_numbers<[1], [0], [0], [1], [0, 0, 1, 1], [], []>} : vector<16x128xf32>, vector<128x32xf32>, vector<16x32xf32> -> vector<16x32xf32>
    %c128 = arith.constant 128 : index
    %c0_3 = arith.constant 0 : index
    %8 = vector.load %arg1[%c128, %c0_3] : memref<672x128xf32, #tpu.memory_space<vmem>>, vector<16x32xf32>
    %9 = arith.addf %7, %8 : vector<16x32xf32>
    %10 = tpu.iota {dimensions = array<i32: 0>} : vector<64x64xi32>
    %c3_i32 = arith.constant 3 : i32
    %11 = vector.broadcast %c3_i32 : i32 to vector<64x64xi32>
    %12 = arith.shrui %10, %11 : vector<64x64xi32>
    %13 = tpu.iota {dimensions = array<i32: 1>} : vector<64x64xi32>
    %c3_i32_4 = arith.constant 3 : i32
    %14 = vector.broadcast %c3_i32_4 : i32 to vector<64x64xi32>
    %15 = arith.shrui %13, %14 : vector<64x64xi32>
    %16 = arith.cmpi eq, %12, %15 : vector<64x64xi32>
    %cst_5 = arith.constant 0.000000e+00 : f32
    %cst_6 = arith.constant -1.000000e+30 : f32
    %17 = vector.broadcast %cst_5 : f32 to vector<64x64xf32>
    %18 = vector.broadcast %cst_6 : f32 to vector<64x64xf32>
    %19 = arith.select %16, %17, %18 : vector<64x64xi1>, vector<64x64xf32>
    %20 = tpu.iota {dimensions = array<i32: 0>} : vector<16x16xi32>
    %c3_i32_7 = arith.constant 3 : i32
    %21 = vector.broadcast %c3_i32_7 : i32 to vector<16x16xi32>
    %22 = arith.shrui %20, %21 : vector<16x16xi32>
    %23 = tpu.iota {dimensions = array<i32: 1>} : vector<16x16xi32>
    %c3_i32_8 = arith.constant 3 : i32
    %24 = vector.broadcast %c3_i32_8 : i32 to vector<16x16xi32>
    %25 = arith.shrui %23, %24 : vector<16x16xi32>
    %26 = arith.cmpi eq, %22, %25 : vector<16x16xi32>
    %cst_9 = arith.constant 0.000000e+00 : f32
    %cst_10 = arith.constant -1.000000e+30 : f32
    %27 = vector.broadcast %cst_9 : f32 to vector<16x16xf32>
    %28 = vector.broadcast %cst_10 : f32 to vector<16x16xf32>
    %29 = arith.select %26, %27, %28 : vector<16x16xi1>, vector<16x16xf32>
    %c144 = arith.constant 144 : index
    %c0_11 = arith.constant 0 : index
    %30 = vector.load %arg1[%c144, %c0_11] : memref<672x128xf32, #tpu.memory_space<vmem>>, vector<32x96xf32>
    %cst_12 = arith.constant dense<0.000000e+00> : vector<16x96xf32>
    %31 = tpu.matmul %9, %30, %cst_12 {dimension_numbers = #tpu.dot_dimension_numbers<[1], [0], [0], [1], [0, 0, 1, 1], [], []>} : vector<16x32xf32>, vector<32x96xf32>, vector<16x96xf32> -> vector<16x96xf32>
    %c176 = arith.constant 176 : index
    %c0_13 = arith.constant 0 : index
    %32 = vector.load %arg1[%c176, %c0_13] : memref<672x128xf32, #tpu.memory_space<vmem>>, vector<1x96xf32>
    %33 = vector.broadcast %32 : vector<1x96xf32> to vector<16x96xf32>
    %34 = arith.addf %31, %33 : vector<16x96xf32>
    %35 = vector.extract_strided_slice %34 {offsets = [0, 0], sizes = [16, 24], strides = [1, 1]} : vector<16x96xf32> to vector<16x24xf32>
    %36 = vector.extract_strided_slice %34 {offsets = [0, 24], sizes = [16, 24], strides = [1, 1]} : vector<16x96xf32> to vector<16x24xf32>
    %37 = vector.extract_strided_slice %34 {offsets = [0, 48], sizes = [16, 24], strides = [1, 1]} : vector<16x96xf32> to vector<16x24xf32>
    %38 = vector.extract_strided_slice %34 {offsets = [0, 72], sizes = [16, 24], strides = [1, 1]} : vector<16x96xf32> to vector<16x24xf32>
    %39 = tpu.concatenate %35, %36, %37, %38 in 0 : vector<16x24xf32>, vector<16x24xf32>, vector<16x24xf32>, vector<16x24xf32> -> vector<64x24xf32>
    %40 = vector.extract_strided_slice %39 {offsets = [0, 0], sizes = [64, 8], strides = [1, 1]} : vector<64x24xf32> to vector<64x8xf32>
    %cst_14 = arith.constant 0.353553385 : f32
    %41 = vector.broadcast %cst_14 : f32 to vector<64x8xf32>
    %42 = arith.mulf %40, %41 : vector<64x8xf32>
    %43 = vector.extract_strided_slice %39 {offsets = [0, 8], sizes = [64, 8], strides = [1, 1]} : vector<64x24xf32> to vector<64x8xf32>
    %44 = vector.extract_strided_slice %39 {offsets = [0, 16], sizes = [64, 8], strides = [1, 1]} : vector<64x24xf32> to vector<64x8xf32>
    %cst_15 = arith.constant dense<0.000000e+00> : vector<64x64xf32>
    %45 = tpu.matmul %42, %43, %cst_15 {dimension_numbers = #tpu.dot_dimension_numbers<[1], [1], [0], [0], [0, 0, 1, 0], [], []>} : vector<64x8xf32>, vector<64x8xf32>, vector<64x64xf32> -> vector<64x64xf32>
    %46 = arith.addf %45, %19 : vector<64x64xf32>
    %cst_16 = arith.constant dense<0xFF800000> : vector<64xf32>
    %47 = vector.multi_reduction <maximumf>, %46, %cst_16 [1] : vector<64x64xf32> to vector<64xf32>
    %48 = vector.shape_cast %47 : vector<64xf32> to vector<64x1xf32>
    %49 = vector.broadcast %48 : vector<64x1xf32> to vector<64x64xf32>
    %50 = arith.subf %46, %49 : vector<64x64xf32>
    %51 = math.exp %50 : vector<64x64xf32>
    %cst_17 = arith.constant dense<0.000000e+00> : vector<64xf32>
    %52 = vector.multi_reduction <add>, %51, %cst_17 [1] : vector<64x64xf32> to vector<64xf32>
    %53 = vector.shape_cast %52 : vector<64xf32> to vector<64x1xf32>
    %54 = tpu.reciprocal %53 : vector<64x1xf32> -> vector<64x1xf32>
    %55 = vector.broadcast %54 : vector<64x1xf32> to vector<64x64xf32>
    %56 = arith.mulf %51, %55 : vector<64x64xf32>
    %cst_18 = arith.constant dense<0.000000e+00> : vector<64x8xf32>
    %57 = tpu.matmul %56, %44, %cst_18 {dimension_numbers = #tpu.dot_dimension_numbers<[1], [0], [0], [1], [0, 0, 1, 1], [], []>} : vector<64x64xf32>, vector<64x8xf32>, vector<64x8xf32> -> vector<64x8xf32>
    %58 = vector.extract_strided_slice %57 {offsets = [0, 0], sizes = [16, 8], strides = [1, 1]} : vector<64x8xf32> to vector<16x8xf32>
    %59 = vector.extract_strided_slice %57 {offsets = [16, 0], sizes = [16, 8], strides = [1, 1]} : vector<64x8xf32> to vector<16x8xf32>
    %60 = vector.extract_strided_slice %57 {offsets = [32, 0], sizes = [16, 8], strides = [1, 1]} : vector<64x8xf32> to vector<16x8xf32>
    %61 = vector.extract_strided_slice %57 {offsets = [48, 0], sizes = [16, 8], strides = [1, 1]} : vector<64x8xf32> to vector<16x8xf32>
    %62 = tpu.concatenate %58, %59, %60, %61 in 1 : vector<16x8xf32>, vector<16x8xf32>, vector<16x8xf32>, vector<16x8xf32> -> vector<16x32xf32>
    %c184 = arith.constant 184 : index
    %c0_19 = arith.constant 0 : index
    %63 = vector.load %arg1[%c184, %c0_19] : memref<672x128xf32, #tpu.memory_space<vmem>>, vector<32x32xf32>
    %cst_20 = arith.constant dense<0.000000e+00> : vector<16x32xf32>
    %64 = tpu.matmul %62, %63, %cst_20 {dimension_numbers = #tpu.dot_dimension_numbers<[1], [0], [0], [1], [0, 0, 1, 1], [], []>} : vector<16x32xf32>, vector<32x32xf32>, vector<16x32xf32> -> vector<16x32xf32>
    %c216 = arith.constant 216 : index
    %c0_21 = arith.constant 0 : index
    %65 = vector.load %arg1[%c216, %c0_21] : memref<672x128xf32, #tpu.memory_space<vmem>>, vector<1x32xf32>
    %66 = vector.broadcast %65 : vector<1x32xf32> to vector<16x32xf32>
    %67 = arith.addf %64, %66 : vector<16x32xf32>
    %68 = arith.addf %9, %67 : vector<16x32xf32>
    %c224 = arith.constant 224 : index
    %c0_22 = arith.constant 0 : index
    %69 = vector.load %arg1[%c224, %c0_22] : memref<672x128xf32, #tpu.memory_space<vmem>>, vector<1x32xf32>
    %c232 = arith.constant 232 : index
    %c0_23 = arith.constant 0 : index
    %70 = vector.load %arg1[%c232, %c0_23] : memref<672x128xf32, #tpu.memory_space<vmem>>, vector<1x32xf32>
    %cst_24 = arith.constant dense<0.000000e+00> : vector<16xf32>
    %71 = vector.multi_reduction <add>, %68, %cst_24 [1] : vector<16x32xf32> to vector<16xf32>
    %72 = vector.shape_cast %71 : vector<16xf32> to vector<16x1xf32>
    %cst_25 = arith.constant 3.200000e+01 : f32
    %73 = vector.broadcast %cst_25 : f32 to vector<16x1xf32>
    %74 = arith.divf %72, %73 : vector<16x1xf32>
    %75 = vector.broadcast %74 : vector<16x1xf32> to vector<16x32xf32>
    %76 = arith.subf %68, %75 : vector<16x32xf32>
    %77 = arith.mulf %76, %76 : vector<16x32xf32>
    %cst_26 = arith.constant dense<0.000000e+00> : vector<16xf32>
    %78 = vector.multi_reduction <add>, %77, %cst_26 [1] : vector<16x32xf32> to vector<16xf32>
    %79 = vector.shape_cast %78 : vector<16xf32> to vector<16x1xf32>
    %cst_27 = arith.constant 3.200000e+01 : f32
    %80 = vector.broadcast %cst_27 : f32 to vector<16x1xf32>
    %81 = arith.divf %79, %80 : vector<16x1xf32>
    %82 = vector.broadcast %74 : vector<16x1xf32> to vector<16x32xf32>
    %83 = arith.subf %68, %82 : vector<16x32xf32>
    %cst_28 = arith.constant 9.99999974E-6 : f32
    %84 = vector.broadcast %cst_28 : f32 to vector<16x1xf32>
    %85 = arith.addf %81, %84 : vector<16x1xf32>
    %86 = math.rsqrt %85 : vector<16x1xf32>
    %87 = vector.broadcast %86 : vector<16x1xf32> to vector<16x32xf32>
    %88 = arith.mulf %83, %87 : vector<16x32xf32>
    %89 = vector.broadcast %69 : vector<1x32xf32> to vector<16x32xf32>
    %90 = arith.mulf %88, %89 : vector<16x32xf32>
    %91 = vector.broadcast %70 : vector<1x32xf32> to vector<16x32xf32>
    %92 = arith.addf %90, %91 : vector<16x32xf32>
    %c240 = arith.constant 240 : index
    %c0_29 = arith.constant 0 : index
    %93 = vector.load %arg1[%c240, %c0_29] : memref<672x128xf32, #tpu.memory_space<vmem>>, vector<32x64xf32>
    %cst_30 = arith.constant dense<0.000000e+00> : vector<16x64xf32>
    %94 = tpu.matmul %92, %93, %cst_30 {dimension_numbers = #tpu.dot_dimension_numbers<[1], [0], [0], [1], [0, 0, 1, 1], [], []>} : vector<16x32xf32>, vector<32x64xf32>, vector<16x64xf32> -> vector<16x64xf32>
    %c272 = arith.constant 272 : index
    %c0_31 = arith.constant 0 : index
    %95 = vector.load %arg1[%c272, %c0_31] : memref<672x128xf32, #tpu.memory_space<vmem>>, vector<1x64xf32>
    %96 = vector.broadcast %95 : vector<1x64xf32> to vector<16x64xf32>
    %97 = arith.addf %94, %96 : vector<16x64xf32>
    %cst_32 = arith.constant 0.000000e+00 : f32
    %98 = vector.broadcast %cst_32 : f32 to vector<16x64xf32>
    %99 = arith.maximumf %97, %98 : vector<16x64xf32>
    %c280 = arith.constant 280 : index
    %c0_33 = arith.constant 0 : index
    %100 = vector.load %arg1[%c280, %c0_33] : memref<672x128xf32, #tpu.memory_space<vmem>>, vector<64x32xf32>
    %cst_34 = arith.constant dense<0.000000e+00> : vector<16x32xf32>
    %101 = tpu.matmul %99, %100, %cst_34 {dimension_numbers = #tpu.dot_dimension_numbers<[1], [0], [0], [1], [0, 0, 1, 1], [], []>} : vector<16x64xf32>, vector<64x32xf32>, vector<16x32xf32> -> vector<16x32xf32>
    %c344 = arith.constant 344 : index
    %c0_35 = arith.constant 0 : index
    %102 = vector.load %arg1[%c344, %c0_35] : memref<672x128xf32, #tpu.memory_space<vmem>>, vector<1x32xf32>
    %103 = vector.broadcast %102 : vector<1x32xf32> to vector<16x32xf32>
    %104 = arith.addf %101, %103 : vector<16x32xf32>
    %105 = arith.addf %92, %104 : vector<16x32xf32>
    %c352 = arith.constant 352 : index
    %c0_36 = arith.constant 0 : index
    %106 = vector.load %arg1[%c352, %c0_36] : memref<672x128xf32, #tpu.memory_space<vmem>>, vector<1x32xf32>
    %c360 = arith.constant 360 : index
    %c0_37 = arith.constant 0 : index
    %107 = vector.load %arg1[%c360, %c0_37] : memref<672x128xf32, #tpu.memory_space<vmem>>, vector<1x32xf32>
    %cst_38 = arith.constant dense<0.000000e+00> : vector<16xf32>
    %108 = vector.multi_reduction <add>, %105, %cst_38 [1] : vector<16x32xf32> to vector<16xf32>
    %109 = vector.shape_cast %108 : vector<16xf32> to vector<16x1xf32>
    %cst_39 = arith.constant 3.200000e+01 : f32
    %110 = vector.broadcast %cst_39 : f32 to vector<16x1xf32>
    %111 = arith.divf %109, %110 : vector<16x1xf32>
    %112 = vector.broadcast %111 : vector<16x1xf32> to vector<16x32xf32>
    %113 = arith.subf %105, %112 : vector<16x32xf32>
    %114 = arith.mulf %113, %113 : vector<16x32xf32>
    %cst_40 = arith.constant dense<0.000000e+00> : vector<16xf32>
    %115 = vector.multi_reduction <add>, %114, %cst_40 [1] : vector<16x32xf32> to vector<16xf32>
    %116 = vector.shape_cast %115 : vector<16xf32> to vector<16x1xf32>
    %cst_41 = arith.constant 3.200000e+01 : f32
    %117 = vector.broadcast %cst_41 : f32 to vector<16x1xf32>
    %118 = arith.divf %116, %117 : vector<16x1xf32>
    %119 = vector.broadcast %111 : vector<16x1xf32> to vector<16x32xf32>
    %120 = arith.subf %105, %119 : vector<16x32xf32>
    %cst_42 = arith.constant 9.99999974E-6 : f32
    %121 = vector.broadcast %cst_42 : f32 to vector<16x1xf32>
    %122 = arith.addf %118, %121 : vector<16x1xf32>
    %123 = math.rsqrt %122 : vector<16x1xf32>
    %124 = vector.broadcast %123 : vector<16x1xf32> to vector<16x32xf32>
    %125 = arith.mulf %120, %124 : vector<16x32xf32>
    %126 = vector.broadcast %106 : vector<1x32xf32> to vector<16x32xf32>
    %127 = arith.mulf %125, %126 : vector<16x32xf32>
    %128 = vector.broadcast %107 : vector<1x32xf32> to vector<16x32xf32>
    %129 = arith.addf %127, %128 : vector<16x32xf32>
    %c368 = arith.constant 368 : index
    %c0_43 = arith.constant 0 : index
    %130 = vector.load %arg1[%c368, %c0_43] : memref<672x128xf32, #tpu.memory_space<vmem>>, vector<32x96xf32>
    %cst_44 = arith.constant dense<0.000000e+00> : vector<16x96xf32>
    %131 = tpu.matmul %129, %130, %cst_44 {dimension_numbers = #tpu.dot_dimension_numbers<[1], [0], [0], [1], [0, 0, 1, 1], [], []>} : vector<16x32xf32>, vector<32x96xf32>, vector<16x96xf32> -> vector<16x96xf32>
    %c400 = arith.constant 400 : index
    %c0_45 = arith.constant 0 : index
    %132 = vector.load %arg1[%c400, %c0_45] : memref<672x128xf32, #tpu.memory_space<vmem>>, vector<1x96xf32>
    %133 = vector.broadcast %132 : vector<1x96xf32> to vector<16x96xf32>
    %134 = arith.addf %131, %133 : vector<16x96xf32>
    %135 = vector.extract_strided_slice %134 {offsets = [0, 0], sizes = [16, 24], strides = [1, 1]} : vector<16x96xf32> to vector<16x24xf32>
    %136 = vector.extract_strided_slice %134 {offsets = [0, 24], sizes = [16, 24], strides = [1, 1]} : vector<16x96xf32> to vector<16x24xf32>
    %137 = vector.extract_strided_slice %134 {offsets = [0, 48], sizes = [16, 24], strides = [1, 1]} : vector<16x96xf32> to vector<16x24xf32>
    %138 = vector.extract_strided_slice %134 {offsets = [0, 72], sizes = [16, 24], strides = [1, 1]} : vector<16x96xf32> to vector<16x24xf32>
    %139 = tpu.concatenate %135, %136, %137, %138 in 0 : vector<16x24xf32>, vector<16x24xf32>, vector<16x24xf32>, vector<16x24xf32> -> vector<64x24xf32>
    %140 = vector.extract_strided_slice %139 {offsets = [0, 0], sizes = [64, 8], strides = [1, 1]} : vector<64x24xf32> to vector<64x8xf32>
    %cst_46 = arith.constant 0.353553385 : f32
    %141 = vector.broadcast %cst_46 : f32 to vector<64x8xf32>
    %142 = arith.mulf %140, %141 : vector<64x8xf32>
    %143 = vector.extract_strided_slice %139 {offsets = [0, 8], sizes = [64, 8], strides = [1, 1]} : vector<64x24xf32> to vector<64x8xf32>
    %144 = vector.extract_strided_slice %139 {offsets = [0, 16], sizes = [64, 8], strides = [1, 1]} : vector<64x24xf32> to vector<64x8xf32>
    %cst_47 = arith.constant dense<0.000000e+00> : vector<64x64xf32>
    %145 = tpu.matmul %142, %143, %cst_47 {dimension_numbers = #tpu.dot_dimension_numbers<[1], [1], [0], [0], [0, 0, 1, 0], [], []>} : vector<64x8xf32>, vector<64x8xf32>, vector<64x64xf32> -> vector<64x64xf32>
    %146 = arith.addf %145, %19 : vector<64x64xf32>
    %cst_48 = arith.constant dense<0xFF800000> : vector<64xf32>
    %147 = vector.multi_reduction <maximumf>, %146, %cst_48 [1] : vector<64x64xf32> to vector<64xf32>
    %148 = vector.shape_cast %147 : vector<64xf32> to vector<64x1xf32>
    %149 = vector.broadcast %148 : vector<64x1xf32> to vector<64x64xf32>
    %150 = arith.subf %146, %149 : vector<64x64xf32>
    %151 = math.exp %150 : vector<64x64xf32>
    %cst_49 = arith.constant dense<0.000000e+00> : vector<64xf32>
    %152 = vector.multi_reduction <add>, %151, %cst_49 [1] : vector<64x64xf32> to vector<64xf32>
    %153 = vector.shape_cast %152 : vector<64xf32> to vector<64x1xf32>
    %154 = tpu.reciprocal %153 : vector<64x1xf32> -> vector<64x1xf32>
    %155 = vector.broadcast %154 : vector<64x1xf32> to vector<64x64xf32>
    %156 = arith.mulf %151, %155 : vector<64x64xf32>
    %cst_50 = arith.constant dense<0.000000e+00> : vector<64x8xf32>
    %157 = tpu.matmul %156, %144, %cst_50 {dimension_numbers = #tpu.dot_dimension_numbers<[1], [0], [0], [1], [0, 0, 1, 1], [], []>} : vector<64x64xf32>, vector<64x8xf32>, vector<64x8xf32> -> vector<64x8xf32>
    %158 = vector.extract_strided_slice %157 {offsets = [0, 0], sizes = [16, 8], strides = [1, 1]} : vector<64x8xf32> to vector<16x8xf32>
    %159 = vector.extract_strided_slice %157 {offsets = [16, 0], sizes = [16, 8], strides = [1, 1]} : vector<64x8xf32> to vector<16x8xf32>
    %160 = vector.extract_strided_slice %157 {offsets = [32, 0], sizes = [16, 8], strides = [1, 1]} : vector<64x8xf32> to vector<16x8xf32>
    %161 = vector.extract_strided_slice %157 {offsets = [48, 0], sizes = [16, 8], strides = [1, 1]} : vector<64x8xf32> to vector<16x8xf32>
    %162 = tpu.concatenate %158, %159, %160, %161 in 1 : vector<16x8xf32>, vector<16x8xf32>, vector<16x8xf32>, vector<16x8xf32> -> vector<16x32xf32>
    %c408 = arith.constant 408 : index
    %c0_51 = arith.constant 0 : index
    %163 = vector.load %arg1[%c408, %c0_51] : memref<672x128xf32, #tpu.memory_space<vmem>>, vector<32x32xf32>
    %cst_52 = arith.constant dense<0.000000e+00> : vector<16x32xf32>
    %164 = tpu.matmul %162, %163, %cst_52 {dimension_numbers = #tpu.dot_dimension_numbers<[1], [0], [0], [1], [0, 0, 1, 1], [], []>} : vector<16x32xf32>, vector<32x32xf32>, vector<16x32xf32> -> vector<16x32xf32>
    %c440 = arith.constant 440 : index
    %c0_53 = arith.constant 0 : index
    %165 = vector.load %arg1[%c440, %c0_53] : memref<672x128xf32, #tpu.memory_space<vmem>>, vector<1x32xf32>
    %166 = vector.broadcast %165 : vector<1x32xf32> to vector<16x32xf32>
    %167 = arith.addf %164, %166 : vector<16x32xf32>
    %168 = arith.addf %129, %167 : vector<16x32xf32>
    %c448 = arith.constant 448 : index
    %c0_54 = arith.constant 0 : index
    %169 = vector.load %arg1[%c448, %c0_54] : memref<672x128xf32, #tpu.memory_space<vmem>>, vector<1x32xf32>
    %c456 = arith.constant 456 : index
    %c0_55 = arith.constant 0 : index
    %170 = vector.load %arg1[%c456, %c0_55] : memref<672x128xf32, #tpu.memory_space<vmem>>, vector<1x32xf32>
    %cst_56 = arith.constant dense<0.000000e+00> : vector<16xf32>
    %171 = vector.multi_reduction <add>, %168, %cst_56 [1] : vector<16x32xf32> to vector<16xf32>
    %172 = vector.shape_cast %171 : vector<16xf32> to vector<16x1xf32>
    %cst_57 = arith.constant 3.200000e+01 : f32
    %173 = vector.broadcast %cst_57 : f32 to vector<16x1xf32>
    %174 = arith.divf %172, %173 : vector<16x1xf32>
    %175 = vector.broadcast %174 : vector<16x1xf32> to vector<16x32xf32>
    %176 = arith.subf %168, %175 : vector<16x32xf32>
    %177 = arith.mulf %176, %176 : vector<16x32xf32>
    %cst_58 = arith.constant dense<0.000000e+00> : vector<16xf32>
    %178 = vector.multi_reduction <add>, %177, %cst_58 [1] : vector<16x32xf32> to vector<16xf32>
    %179 = vector.shape_cast %178 : vector<16xf32> to vector<16x1xf32>
    %cst_59 = arith.constant 3.200000e+01 : f32
    %180 = vector.broadcast %cst_59 : f32 to vector<16x1xf32>
    %181 = arith.divf %179, %180 : vector<16x1xf32>
    %182 = vector.broadcast %174 : vector<16x1xf32> to vector<16x32xf32>
    %183 = arith.subf %168, %182 : vector<16x32xf32>
    %cst_60 = arith.constant 9.99999974E-6 : f32
    %184 = vector.broadcast %cst_60 : f32 to vector<16x1xf32>
    %185 = arith.addf %181, %184 : vector<16x1xf32>
    %186 = math.rsqrt %185 : vector<16x1xf32>
    %187 = vector.broadcast %186 : vector<16x1xf32> to vector<16x32xf32>
    %188 = arith.mulf %183, %187 : vector<16x32xf32>
    %189 = vector.broadcast %169 : vector<1x32xf32> to vector<16x32xf32>
    %190 = arith.mulf %188, %189 : vector<16x32xf32>
    %191 = vector.broadcast %170 : vector<1x32xf32> to vector<16x32xf32>
    %192 = arith.addf %190, %191 : vector<16x32xf32>
    %c464 = arith.constant 464 : index
    %c0_61 = arith.constant 0 : index
    %193 = vector.load %arg1[%c464, %c0_61] : memref<672x128xf32, #tpu.memory_space<vmem>>, vector<32x64xf32>
    %cst_62 = arith.constant dense<0.000000e+00> : vector<16x64xf32>
    %194 = tpu.matmul %192, %193, %cst_62 {dimension_numbers = #tpu.dot_dimension_numbers<[1], [0], [0], [1], [0, 0, 1, 1], [], []>} : vector<16x32xf32>, vector<32x64xf32>, vector<16x64xf32> -> vector<16x64xf32>
    %c496 = arith.constant 496 : index
    %c0_63 = arith.constant 0 : index
    %195 = vector.load %arg1[%c496, %c0_63] : memref<672x128xf32, #tpu.memory_space<vmem>>, vector<1x64xf32>
    %196 = vector.broadcast %195 : vector<1x64xf32> to vector<16x64xf32>
    %197 = arith.addf %194, %196 : vector<16x64xf32>
    %cst_64 = arith.constant 0.000000e+00 : f32
    %198 = vector.broadcast %cst_64 : f32 to vector<16x64xf32>
    %199 = arith.maximumf %197, %198 : vector<16x64xf32>
    %c504 = arith.constant 504 : index
    %c0_65 = arith.constant 0 : index
    %200 = vector.load %arg1[%c504, %c0_65] : memref<672x128xf32, #tpu.memory_space<vmem>>, vector<64x32xf32>
    %cst_66 = arith.constant dense<0.000000e+00> : vector<16x32xf32>
    %201 = tpu.matmul %199, %200, %cst_66 {dimension_numbers = #tpu.dot_dimension_numbers<[1], [0], [0], [1], [0, 0, 1, 1], [], []>} : vector<16x64xf32>, vector<64x32xf32>, vector<16x32xf32> -> vector<16x32xf32>
    %c568 = arith.constant 568 : index
    %c0_67 = arith.constant 0 : index
    %202 = vector.load %arg1[%c568, %c0_67] : memref<672x128xf32, #tpu.memory_space<vmem>>, vector<1x32xf32>
    %203 = vector.broadcast %202 : vector<1x32xf32> to vector<16x32xf32>
    %204 = arith.addf %201, %203 : vector<16x32xf32>
    %205 = arith.addf %192, %204 : vector<16x32xf32>
    %c576 = arith.constant 576 : index
    %c0_68 = arith.constant 0 : index
    %206 = vector.load %arg1[%c576, %c0_68] : memref<672x128xf32, #tpu.memory_space<vmem>>, vector<1x32xf32>
    %c584 = arith.constant 584 : index
    %c0_69 = arith.constant 0 : index
    %207 = vector.load %arg1[%c584, %c0_69] : memref<672x128xf32, #tpu.memory_space<vmem>>, vector<1x32xf32>
    %cst_70 = arith.constant dense<0.000000e+00> : vector<16xf32>
    %208 = vector.multi_reduction <add>, %205, %cst_70 [1] : vector<16x32xf32> to vector<16xf32>
    %209 = vector.shape_cast %208 : vector<16xf32> to vector<16x1xf32>
    %cst_71 = arith.constant 3.200000e+01 : f32
    %210 = vector.broadcast %cst_71 : f32 to vector<16x1xf32>
    %211 = arith.divf %209, %210 : vector<16x1xf32>
    %212 = vector.broadcast %211 : vector<16x1xf32> to vector<16x32xf32>
    %213 = arith.subf %205, %212 : vector<16x32xf32>
    %214 = arith.mulf %213, %213 : vector<16x32xf32>
    %cst_72 = arith.constant dense<0.000000e+00> : vector<16xf32>
    %215 = vector.multi_reduction <add>, %214, %cst_72 [1] : vector<16x32xf32> to vector<16xf32>
    %216 = vector.shape_cast %215 : vector<16xf32> to vector<16x1xf32>
    %cst_73 = arith.constant 3.200000e+01 : f32
    %217 = vector.broadcast %cst_73 : f32 to vector<16x1xf32>
    %218 = arith.divf %216, %217 : vector<16x1xf32>
    %219 = vector.broadcast %211 : vector<16x1xf32> to vector<16x32xf32>
    %220 = arith.subf %205, %219 : vector<16x32xf32>
    %cst_74 = arith.constant 9.99999974E-6 : f32
    %221 = vector.broadcast %cst_74 : f32 to vector<16x1xf32>
    %222 = arith.addf %218, %221 : vector<16x1xf32>
    %223 = math.rsqrt %222 : vector<16x1xf32>
    %224 = vector.broadcast %223 : vector<16x1xf32> to vector<16x32xf32>
    %225 = arith.mulf %220, %224 : vector<16x32xf32>
    %226 = vector.broadcast %206 : vector<1x32xf32> to vector<16x32xf32>
    %227 = arith.mulf %225, %226 : vector<16x32xf32>
    %228 = vector.broadcast %207 : vector<1x32xf32> to vector<16x32xf32>
    %229 = arith.addf %227, %228 : vector<16x32xf32>
    %c592 = arith.constant 592 : index
    %c0_75 = arith.constant 0 : index
    %230 = vector.load %arg1[%c592, %c0_75] : memref<672x128xf32, #tpu.memory_space<vmem>>, vector<32x96xf32>
    %cst_76 = arith.constant dense<0.000000e+00> : vector<16x96xf32>
    %231 = tpu.matmul %229, %230, %cst_76 {dimension_numbers = #tpu.dot_dimension_numbers<[1], [0], [0], [1], [0, 0, 1, 1], [], []>} : vector<16x32xf32>, vector<32x96xf32>, vector<16x96xf32> -> vector<16x96xf32>
    %c624 = arith.constant 624 : index
    %c0_77 = arith.constant 0 : index
    %232 = vector.load %arg1[%c624, %c0_77] : memref<672x128xf32, #tpu.memory_space<vmem>>, vector<1x96xf32>
    %233 = vector.broadcast %232 : vector<1x96xf32> to vector<16x96xf32>
    %234 = arith.addf %231, %233 : vector<16x96xf32>
    %235 = vector.extract_strided_slice %234 {offsets = [0, 0], sizes = [16, 32], strides = [1, 1]} : vector<16x96xf32> to vector<16x32xf32>
    %cst_78 = arith.constant 0.176776692 : f32
    %236 = vector.broadcast %cst_78 : f32 to vector<16x32xf32>
    %237 = arith.mulf %235, %236 : vector<16x32xf32>
    %238 = vector.extract_strided_slice %234 {offsets = [0, 32], sizes = [16, 32], strides = [1, 1]} : vector<16x96xf32> to vector<16x32xf32>
    %239 = vector.extract_strided_slice %234 {offsets = [0, 64], sizes = [16, 32], strides = [1, 1]} : vector<16x96xf32> to vector<16x32xf32>
    %cst_79 = arith.constant dense<0.000000e+00> : vector<16x16xf32>
    %240 = tpu.matmul %237, %238, %cst_79 {dimension_numbers = #tpu.dot_dimension_numbers<[1], [1], [0], [0], [0, 0, 1, 0], [], []>} : vector<16x32xf32>, vector<16x32xf32>, vector<16x16xf32> -> vector<16x16xf32>
    %241 = arith.addf %240, %29 : vector<16x16xf32>
    %cst_80 = arith.constant dense<0xFF800000> : vector<16xf32>
    %242 = vector.multi_reduction <maximumf>, %241, %cst_80 [1] : vector<16x16xf32> to vector<16xf32>
    %243 = vector.shape_cast %242 : vector<16xf32> to vector<16x1xf32>
    %244 = vector.broadcast %243 : vector<16x1xf32> to vector<16x16xf32>
    %245 = arith.subf %241, %244 : vector<16x16xf32>
    %246 = math.exp %245 : vector<16x16xf32>
    %cst_81 = arith.constant dense<0.000000e+00> : vector<16xf32>
    %247 = vector.multi_reduction <add>, %246, %cst_81 [1] : vector<16x16xf32> to vector<16xf32>
    %248 = vector.shape_cast %247 : vector<16xf32> to vector<16x1xf32>
    %249 = tpu.reciprocal %248 : vector<16x1xf32> -> vector<16x1xf32>
    %250 = vector.broadcast %249 : vector<16x1xf32> to vector<16x16xf32>
    %251 = arith.mulf %246, %250 : vector<16x16xf32>
    %cst_82 = arith.constant dense<0.000000e+00> : vector<16x32xf32>
    %252 = tpu.matmul %251, %239, %cst_82 {dimension_numbers = #tpu.dot_dimension_numbers<[1], [0], [0], [1], [0, 0, 1, 1], [], []>} : vector<16x16xf32>, vector<16x32xf32>, vector<16x32xf32> -> vector<16x32xf32>
    %253 = vector.extract_strided_slice %252 {offsets = [0, 0], sizes = [8, 32], strides = [1, 1]} : vector<16x32xf32> to vector<8x32xf32>
    %cst_83 = arith.constant dense<0xFF800000> : vector<32xf32>
    %254 = vector.multi_reduction <maximumf>, %253, %cst_83 [0] : vector<8x32xf32> to vector<32xf32>
    %255 = vector.shape_cast %254 : vector<32xf32> to vector<1x32xf32>
    %256 = vector.extract_strided_slice %252 {offsets = [8, 0], sizes = [8, 32], strides = [1, 1]} : vector<16x32xf32> to vector<8x32xf32>
    %cst_84 = arith.constant dense<0xFF800000> : vector<32xf32>
    %257 = vector.multi_reduction <maximumf>, %256, %cst_84 [0] : vector<8x32xf32> to vector<32xf32>
    %258 = vector.shape_cast %257 : vector<32xf32> to vector<1x32xf32>
    %259 = tpu.concatenate %255, %258 in 0 : vector<1x32xf32>, vector<1x32xf32> -> vector<2x32xf32>
    %c632 = arith.constant 632 : index
    %c0_85 = arith.constant 0 : index
    %260 = vector.load %arg1[%c632, %c0_85] : memref<672x128xf32, #tpu.memory_space<vmem>>, vector<32x128xf32>
    %cst_86 = arith.constant dense<0.000000e+00> : vector<2x128xf32>
    %261 = tpu.matmul %259, %260, %cst_86 {dimension_numbers = #tpu.dot_dimension_numbers<[1], [0], [0], [1], [0, 0, 1, 1], [], []>} : vector<2x32xf32>, vector<32x128xf32>, vector<2x128xf32> -> vector<2x128xf32>
    %c664 = arith.constant 664 : index
    %c0_87 = arith.constant 0 : index
    %262 = vector.load %arg1[%c664, %c0_87] : memref<672x128xf32, #tpu.memory_space<vmem>>, vector<1x128xf32>
    %263 = vector.broadcast %262 : vector<1x128xf32> to vector<2x128xf32>
    %264 = arith.addf %261, %263 : vector<2x128xf32>
    %c0_88 = arith.constant 0 : index
    %c0_89 = arith.constant 0 : index
    %265 = vector.load %arg2[%c0_88, %c0_89] : memref<2x128xf32, #tpu.memory_space<vmem>>, vector<2x128xf32>
    tpu.vector_store %arg2[%c0_88, %c0_89], %264 {strides = array<i32>} : memref<2x128xf32, #tpu.memory_space<vmem>>, vector<2x128xf32>,
    return
  }
}

</mosaic_0001>

<bundles_post_ra>
// kernel: _fused_call.1
= control target key start
LH: loop header
LB: loop body
LE: loop exit
PB: predicated region body
PF: predicated region fallthrough
CT: control target
= control target key end

     0   :  { %7 = vsyncpa [#allocation3], 0  ;;  %s3567_s0 = inlined_call_operand.vmem [shape: s32[16,1], index: 0, kind: input, shape index: {}]   ;;  %s3568_s1 = inlined_call_operand.hbm [shape: f32[672,128], index: 1, kind: input, shape index: {}]   ;;  %s3569_s2 = inlined_call_operand.hbm [shape: f32[2,128], index: 2, kind: output, shape index: {}]  }
   0x1   :  { %8 = vsyncpa [#allocation4], 0  ;;  %s3091_s9 = smov [#allocation2]  }
   0x2   :  { %s16_s10 = sshll.u32 %s3091_s9, 4  ;;  %s17_s10 = int_to_ptr.vmem [resolvable:$true] %s16_s10 }
   0x3   :  { %s3055_s11 = scalar_lea.vmem %s17_s10, 10752  ;;  %p3060_p1 = scmp.lt.s32.totalorder %s17_s10, %s17_s10 }
   0x4   :  { %p3056_p0 = scmp.ne.s32.totalorder %s17_s10, %s3055_s11  ;;  %p3061_p2 = scmp.lt.s32.totalorder %s3055_s11, %s3055_s11 }
   0x6   :  { %p3062_p3 = por %p3061_p2, %p3060_p1 }
   0x8   :  { %p3063_p4 = pnand %p3062_p3, %p3056_p0 }
   0xa   :  { %3066 = shalt.err (!%p3063_p4)
}
   0xb   :  { %s3092_s12 = smov 128   ;;  %s3093_s13 = smov 8  }
   0xc   :  { %22 = dma.hbm_to_vmem [thread:$0]  %s3568_s1, 10752, %s17_s10, [#allocation3], %s3092_s12, %s3092_s12, %s3093_s13  }
   0xd   :  { %3087 = dma.done.wait [#allocation3], 10752  }
   0xe   :  { %3088 = vsyncadd [#allocation3], 4294956544  ;;  %v3094_v0 = vmov 0   ;;  %v26_v1 = vld [vmem:[%s3567_s0] sm:$0xff]  ;;  %v57_v2 = vld [vmem:[#allocation2 + $0x78] sm:$0xff]  ;;  %v28_v20 = vlaneseq  ;;  %v3095_v23 = vmov 1.0  }
   0xf   :  { %2958 = vset.pattern.permute.xlu0 %v3094_v0  ;;  %2653 = vmatprep.subr.mxu0 %v57_v2  ;;  %v56_v3 = vld [vmem:[#allocation2 + $0x70] sm:$0xff]  ;;  %v27_v4 = vld [vmem:[%s3567_s0 + $0x8] sm:$0xff]  ;;  %v54_v6 = vld [vmem:[#allocation2 + $0x60] sm:$0xff]  ;;  %vm178_vm2 = vcmask 261120   ;;  %s3096_s0 = smov 80   ;;  %s3097_s1 = smov 56  }
  0x10   :  { %31 = vperm.xlu0 %2958, %v26_v1   ;;  %2654 = vmatpush3.msra.mxu0 %v57_v2  ;;  %v55_v5 = vld [vmem:[#allocation2 + $0x68] sm:$0xff]  ;;  %v53_v7 = vld [vmem:[#allocation2 + $0x58] sm:$0xff]  ;;  %v52_v9 = vld [vmem:[#allocation2 + $0x50] sm:$0xff]  ;;  %v3135_v21 = vand.u32 127, %v28_v20  ;;  %vm304_vm3 = vcmask 64512   ;;  %s3098_s20 = smov 104  }
  0x11   :  { %2655 = vmatprep.subr.mxu0 %v56_v3  ;;  %v172_v8 = vld [vmem:[#allocation2 + $0xa8] sm:$0xff]  ;;  %v50_v11 = vld [vmem:[#allocation2 + $0x40] sm:$0xff]  ;;  %v49_v12 = vld [vmem:[#allocation2 + $0x38] sm:$0xff]  ;;  %s3099_s21 = smov 120   ;;  %v3224_v61 = vshrl.u32 %v28_v20, 7  ;;  %vm450_vm6 = vcmask 523264  }
  0x12   :  { %2656 = vmatpush3.msra.mxu0 %v56_v3  ;;  %2688 = vmatprep.subr.mxu1 %v172_v8  ;;  %v51_v10 = vld [vmem:[#allocation2 + $0x48] sm:$0xff]  ;;  %v48_v13 = vld [vmem:[#allocation2 + $0x30] sm:$0xff]  ;;  %v46_v15 = vld [vmem:[#allocation2 + $0x20] sm:$0xff]  ;;  %v3228_v63 = vshrl.u32 %v3135_v21, 3  ;;  %s3101_s22 = smov 112   ;;  %s3102_s23 = smov 16  }
  0x13   :  { %2657 = vmatprep.subr.mxu0 %v55_v5  ;;  %2689 = vmatpush3.msra.mxu1 %v172_v8  ;;  %v47_v14 = vld [vmem:[#allocation2 + $0x28] sm:$0xff]  ;;  %v45_v16 = vld [vmem:[#allocation2 + $0x18] sm:$0xff]  ;;  %v44_v17 = vld [vmem:[#allocation2 + $0x10] sm:$0xff]  ;;  %v137_v62 = vadd.s32 8, %v3224_v61  ;;  %v144_v1 = vshrl.u32 %v3224_v61, 3  ;;  %v138_v2 = vadd.s32 16, %v3224_v61 }
  0x14   :  { %34 = vperm.xlu0 %2958, %v27_v4   ;;  %2658 = vmatpush3.msra.mxu0 %v55_v5  ;;  %v43_v18 = vld [vmem:[#allocation2 + $0x8] sm:$0xff]  ;;  %v42_v19 = vld [vmem:[#allocation2] sm:$0xff]  ;;  %v170_v26 = vld [vmem:[#allocation2 + $0x98] sm:$0xff]  ;;  %v139_v3 = vadd.s32 24, %v3224_v61  ;;  %v140_v5 = vadd.s32 32, %v3224_v61  ;;  %s3103_s24 = smov 24  }
  0x15   :  { %2659 = vmatprep.subr.mxu0 %v54_v6  ;;  %v171_v25 = vld [vmem:[#allocation2 + $0xa0] sm:$0xff]  ;;  %v169_v27 = vld [vmem:[#allocation2 + $0x90] sm:$0xff]  ;;  %v59_v30 = vld [vmem:[#allocation2 + $0x88] sm:$0xff]  ;;  %v145_v0 = vshrl.u32 %v137_v62, 3  ;;  %vm153_vm5 = vcmp.eq.s32.totalorder %v144_v1, %v3228_v63  ;;  %v146_v4 = vshrl.u32 %v138_v2, 3  ;;  %vm718_vm13 = vcmask 130048  }
  0x16   :  { %2660 = vmatpush3.msra.mxu0 %v54_v6  ;;  %2690 = vmatprep.subr.mxu1 %v171_v25  ;;  %v58_v29 = vld [vmem:[#allocation2 + $0x80] sm:$0xff]  ;;  %v2405_v34 = vld [vmem:[#allocation2 + $0xb0] ss:$0 sm:$0xff]  ;;  %v3100_v6 = vmov -1e+30   ;;  %v147_v8 = vshrl.u32 %v139_v3, 3 }
  0x17   :  { %2661 = vmatprep.subr.mxu0 %v53_v7  ;;  %2691 = vmatpush3.msra.mxu1 %v171_v25  ;;  %vm154_vm4 = vcmp.eq.s32.totalorder %v145_v0, %v3228_v63  ;;  %vm155_vm7 = vcmp.eq.s32.totalorder %v146_v4, %v3228_v63  ;;  %vm721_vm14 = vcmask 195584   ;;  %s3104_s25 = smov 96   ;;  %s3105_s26 = smov 64   ;;  %vm3107_vm15 = vmmov 0  }
  0x18   :  { %2662 = vmatpush3.msra.mxu0 %v53_v7  ;;  %2692 = vmatprep.subr.mxu1 %v170_v26  ;;  %v3236_v7 = vsel %vm154_vm4, 0.0, %v3100_v6  ;;  %vm156_vm8 = vcmp.eq.s32.totalorder %v147_v8, %v3228_v63  ;;  %v3247_v20 = vsel %vm155_vm7, 0.0, %v3100_v6  ;;  %s3108_s27 = smov [#allocation5]  }
  0x19   :  { %2663 = vmatprep.subr.mxu0 %v52_v9  ;;  %2693 = vmatpush3.msra.mxu1 %v170_v26  ;;  %s2392_s28 = sshll.u32 %s3108_s27, 4  ;;  %s2393_s28 = int_to_ptr.vmem [resolvable:$true] %s2392_s28 }
  0x1a   :  { %2664 = vmatpush3.msra.mxu0 %v52_v9  ;;  %2694 = vmatprep.subr.mxu1 %v169_v27  ;;  %v141_v9 = vadd.s32 40, %v3224_v61  ;;  %s3067_s29 = scalar_lea.vmem %s2393_s28, 32  ;;  %p3072_p6 = scmp.lt.s32.totalorder %s2393_s28, %s2393_s28 }
  0x1b   :  { %2665 = vmatprep.subr.mxu0 %v51_v10  ;;  %2695 = vmatpush3.msra.mxu1 %v169_v27  ;;  %p3068_p5 = scmp.ne.s32.totalorder %s2393_s28, %s3067_s29  ;;  %p3073_p7 = scmp.lt.s32.totalorder %s3067_s29, %s3067_s29 }
  0x1c   :  { %2666 = vmatpush3.msra.mxu0 %v51_v10 }
  0x1d   :  { %2667 = vmatprep.subr.mxu0 %v50_v11  ;;  %p3074_p8 = por %p3073_p7, %p3072_p6 }
  0x1e   :  { %2668 = vmatpush3.msra.mxu0 %v50_v11  ;;  %v3239_v11 = vsel %vm153_vm5, 0.0, %v3100_v6 }
  0x1f   :  { %2669 = vmatprep.subr.mxu0 %v49_v12  ;;  %p3075_p9 = pnand %p3074_p8, %p3068_p5 }
  0x20   :  { %2670 = vmatpush3.msra.mxu0 %v49_v12 }
  0x21   :  { %2671 = vmatprep.subr.mxu0 %v48_v13 }
  0x22   :  { %2672 = vmatpush3.msra.mxu0 %v48_v13  ;;  %v148_v13 = vshrl.u32 %v140_v5, 3 }
  0x23   :  { %2673 = vmatprep.subr.mxu0 %v47_v14 }
  0x24   :  { %2674 = vmatpush3.msra.mxu0 %v47_v14  ;;  %vm157_vm9 = vcmp.eq.s32.totalorder %v148_v13, %v3228_v63 }
  0x25   :  { %2675 = vmatprep.subr.mxu0 %v46_v15  ;;  %v3255_v27 = vsel %vm157_vm9, 0.0, %v3100_v6 }
  0x26   :  { %2676 = vmatpush3.msra.mxu0 %v46_v15 }
  0x27   :  { %2677 = vmatprep.subr.mxu0 %v45_v16 }
  0x28   :  { %2678 = vmatpush3.msra.mxu0 %v45_v16 }
  0x29   :  { %2679 = vmatprep.subr.mxu0 %v44_v17 }
  0x2a   :  { %2680 = vmatpush3.msra.mxu0 %v44_v17  ;;  %v149_v17 = vshrl.u32 %v141_v9, 3 }
  0x2b   :  { %2681 = vmatprep.subr.mxu0 %v43_v18 }
  0x2c   :  { %2682 = vmatpush3.msra.mxu0 %v43_v18  ;;  %v143_v18 = vadd.s32 56, %v3224_v61  ;;  %vm158_vm10 = vcmp.eq.s32.totalorder %v149_v17, %v3228_v63 }
  0x2d   :  { %2683 = vmatprep.subr.mxu0 %v42_v19 }
  0x2e   :  { %2684 = vmatpush3.msra.mxu0 %v42_v19  ;;  %v151_v25 = vshrl.u32 %v143_v18, 3 }
  0x30   :  { %vm160_vm11 = vcmp.eq.s32.totalorder %v151_v25, %v3228_v63 }
  0x8b   :  { %v32_v22 = vpop.permute.xlu0 %31 }
  0x8c   :  { %vm36_vm0 = vcmp.eq.s32.totalorder %v3135_v21, %v32_v22  ;;  %v3251_v22 = vsel %vm156_vm8, 0.0, %v3100_v6 }
  0x8d   :  { %2685 = vmatprep.mubr.msk.f32.mxu0 %vm36_vm0, %v3095_v23  ;;  %vm2301_vm0 = vcmask 1040384  }
  0x8f   :  { %v35_v24 = vpop.permute.xlu0 %34 }
  0x90   :  { %vm37_vm1 = vcmp.eq.s32.totalorder %v3135_v21, %v35_v24 }
  0x91   :  { %2686 = vmatmul.mubr.msk.f32.vlgmr.msra.gmra.mxu0 %vm37_vm1, %v3095_v23 }
 0x151   :  { %v2687_v28 = vpop.f32.mrf.mxu0 }
 0x152   :  { %v3141_v33 = vadd.f32 %v2687_v28, %v59_v30  ;;  %v3259_v30 = vsel %vm158_vm10, 0.0, %v3100_v6 }
 0x153   :  { %v126_v31 = vpop.f32.mrf.mxu0 }
 0x154   :  { %v3139_v32 = vadd.f32 %v126_v31, %v58_v29 }
 0x156   :  { %2696 = vmatprep.mubr.msk.f32.mxu1 %vm178_vm2, %v3139_v32 }
 0x157   :  { %2697 = vmatmul.mubr.msk.f32.vlgmr.msra.gmra.mxu1 %vm178_vm2, %v3141_v33 }
 0x217   :  { %v2698_v35 = vpop.f32.mrf.mxu1 }
 0x218   :  { %v3147_v36 = vadd.f32 %v2698_v35, %v2405_v34 }
 0x219   :  { %v251_v37 = vpop.f32.mrf.mxu1 }
 0x21a   :  { %v3149_v38 = vadd.f32 %v2405_v34, %v251_v37  ;;  %270 = vrot.lane.b32.xlu0 %v3147_v36, %s3096_s0  ;;  %276 = vrot.lane.b32.xlu1 %v3147_v36, %s3097_s1  ;;  %v281_v54 = vmul.f32 0.35355338, %v3147_v36 }
 0x21c   :  { %v280_v39 = vmul.f32 0.35355338, %v3149_v38 }
 0x21e   :  { %264 = vrot.lane.b32.xlu0 %v3147_v36, %s3098_s20  ;;  %274 = vrot.lane.b32.xlu1 %v3149_v38, %s3097_s1 }
 0x21f   :  { %2715 = vmatprep.mubr.msk.f32.mxu1 %vm304_vm3, %v280_v39 }
 0x222   :  { %268 = vrot.lane.b32.xlu1 %v3149_v38, %s3096_s0 }
 0x226   :  { %262 = vrot.lane.b32.xlu1 %v3149_v38, %s3098_s20 }
 0x28c   :  { %v3165_v40 = vpop.permute.xlu1 %276  ;;  %v3169_v41 = vpop.permute.xlu0 %270 }
 0x28d   :  { %302 = vrot.lane.b32.xlu0 %v3165_v40, %s3099_s21  ;;  %v285_v58 = vmul.f32 0.35355338, %v3169_v41  ;;  %v287_v60 = vmul.f32 0.35355338, %v3165_v40 }
 0x290   :  { %v3171_v42 = vpop.permute.xlu1 %274  ;;  %v3177_v43 = vpop.permute.xlu0 %264 }
 0x291   :  { %298 = vrot.lane.b32.xlu0 %v3169_v41, %s3099_s21  ;;  %300 = vrot.lane.b32.xlu1 %v3171_v42, %s3099_s21  ;;  %v283_v56 = vmul.f32 0.35355338, %v3177_v43  ;;  %v286_v59 = vmul.f32 0.35355338, %v3171_v42 }
 0x294   :  { %v3179_v44 = vpop.permute.xlu1 %268 }
 0x295   :  { %294 = vrot.lane.b32.xlu0 %v3177_v43, %s3099_s21  ;;  %296 = vrot.lane.b32.xlu1 %v3179_v44, %s3099_s21  ;;  %v284_v57 = vmul.f32 0.35355338, %v3179_v44 }
 0x298   :  { %v3185_v45 = vpop.permute.xlu1 %262 }
 0x299   :  { %290 = vrot.lane.b32.xlu0 %v3147_v36, %s3099_s21  ;;  %292 = vrot.lane.b32.xlu1 %v3185_v45, %s3099_s21  ;;  %v282_v55 = vmul.f32 0.35355338, %v3185_v45 }
 0x29d   :  { %288 = vrot.lane.b32.xlu1 %v3149_v38, %s3099_s21 }
 0x2ff   :  { %v303_v46 = vpop.permute.xlu0 %302 }
 0x300   :  { %2699 = vmatprep.subr.msk.mxu1 %vm304_vm3, %v303_v46 }
 0x301   :  { %2700 = vmatpush3.xpose.msk.msra.mxu1 %vm304_vm3, %v303_v46  ;;  %v3266_v46 = vsel %vm160_vm11, 0.0, %v3100_v6 }
 0x303   :  { %v301_v47 = vpop.permute.xlu1 %300  ;;  %v299_v48 = vpop.permute.xlu0 %298 }
 0x304   :  { %2701 = vmatprep.subr.msk.mxu1 %vm304_vm3, %v301_v47 }
 0x305   :  { %2702 = vmatpush3.xpose.msk.msra.mxu1 %vm304_vm3, %v301_v47 }
 0x306   :  { %2703 = vmatprep.subr.msk.mxu1 %vm304_vm3, %v299_v48 }
 0x307   :  { %v297_v49 = vpop.permute.xlu1 %296  ;;  %v295_v50 = vpop.permute.xlu0 %294 }
 0x309   :  { %2704 = vmatpush3.xpose.msk.msra.mxu1 %vm304_vm3, %v299_v48 }
 0x30a   :  { %2705 = vmatprep.subr.msk.mxu1 %vm304_vm3, %v297_v49 }
 0x30b   :  { %v293_v51 = vpop.permute.xlu1 %292  ;;  %v291_v52 = vpop.permute.xlu0 %290 }
 0x30d   :  { %2706 = vmatpush3.xpose.msk.msra.mxu1 %vm304_vm3, %v297_v49 }
 0x30e   :  { %2707 = vmatprep.subr.msk.mxu1 %vm304_vm3, %v295_v50 }
 0x30f   :  { %v289_v53 = vpop.permute.xlu1 %288 }
 0x311   :  { %2708 = vmatpush3.xpose.msk.msra.mxu1 %vm304_vm3, %v295_v50 }
 0x312   :  { %2709 = vmatprep.subr.msk.mxu1 %vm304_vm3, %v293_v51 }
 0x315   :  { %2710 = vmatpush3.xpose.msk.msra.mxu1 %vm304_vm3, %v293_v51  ;;  %v142_v51 = vadd.s32 48, %v3224_v61 }
 0x316   :  { %2711 = vmatprep.subr.msk.mxu1 %vm304_vm3, %v291_v52 }
 0x319   :  { %2712 = vmatpush3.xpose.msk.msra.mxu1 %vm304_vm3, %v291_v52  ;;  %v150_v52 = vshrl.u32 %v142_v51, 3 }
 0x31a   :  { %2713 = vmatprep.subr.msk.mxu1 %vm304_vm3, %v289_v53 }
 0x31b   :  { %vm159_vm12 = vcmp.eq.s32.totalorder %v150_v52, %v3228_v63 }
 0x31d   :  { %2714 = vmatpush3.xpose.msk.msra.mxu1 %vm304_vm3, %v289_v53  ;;  %v3281_v53 = vsel %vm159_vm12, 0.0, %v3100_v6 }
 0x320   :  { %2716 = vmatmul.mubr.msk.f32.vlgmr.msra.gmra.mxu1 %vm304_vm3, %v281_v54 }
 0x321   :  { %2718 = vmatprep.mubr.msk.f32.mxu1 %vm304_vm3, %v282_v55 }
 0x324   :  { %2719 = vmatmul.mubr.msk.f32.gmra.mxu1 %vm304_vm3, %v283_v56 }
 0x325   :  { %2721 = vmatprep.mubr.msk.f32.mxu1 %vm304_vm3, %v284_v57 }
 0x328   :  { %2722 = vmatmul.mubr.msk.f32.gmra.mxu1 %vm304_vm3, %v285_v58 }
 0x329   :  { %2724 = vmatprep.mubr.msk.f32.mxu1 %vm304_vm3, %v286_v59 }
 0x32c   :  { %2725 = vmatmul.mubr.msk.f32.gmra.mxu1 %vm304_vm3, %v287_v60 }
 0x3e0   :  { %v2717_v10 = vpop.f32.mrf.mxu1 }
 0x3e1   :  { %v417_v12 = vadd.f32 %v2717_v10, %v3236_v7 }
 0x3e2   :  { %v411_v14 = vpop.f32.mrf.mxu1 }
 0x3e3   :  { %v412_v15 = vadd.f32 %v411_v14, %v3239_v11  ;;  %v454_v16 = vsel %vm450_vm6, %v417_v12, -inf }
 0x3e4   :  { %455 = vmax.xlane.f32.xlu1 %v454_v16  ;;  %v2720_v19 = vpop.f32.mrf.mxu1 }
 0x3e5   :  { %v451_v21 = vsel %vm450_vm6, %v412_v15, -inf  ;;  %v427_v28 = vadd.f32 %v2720_v19, %v3251_v22 }
 0x3e6   :  { %v421_v23 = vpop.f32.mrf.mxu1  ;;  %452 = vmax.xlane.f32.xlu0 %v451_v21 }
 0x3e7   :  { %v422_v24 = vadd.f32 %v421_v23, %v3247_v20  ;;  %v460_v39 = vsel %vm450_vm6, %v427_v28, -inf }
 0x3e8   :  { %v2723_v26 = vpop.f32.mrf.mxu1 }
 0x3e9   :  { %v457_v29 = vsel %vm450_vm6, %v422_v24, -inf  ;;  %v437_v35 = vadd.f32 %v2723_v26, %v3259_v30 }
 0x3ea   :  { %v431_v31 = vpop.f32.mrf.mxu1  ;;  %458 = vmax.xlane.f32.xlu0 %v457_v29 }
 0x3eb   :  { %v432_v34 = vadd.f32 %v431_v31, %v3255_v27  ;;  %v466_v49 = vsel %vm450_vm6, %v437_v35, -inf }
 0x3ec   :  { %v2726_v47 = vpop.f32.mrf.mxu1 }
 0x3ed   :  { %v463_v37 = vsel %vm450_vm6, %v432_v34, -inf  ;;  %v447_v48 = vadd.f32 %v2726_v47, %v3266_v46 }
 0x3ee   :  { %464 = vmax.xlane.f32.xlu1 %v463_v37  ;;  %461 = vmax.xlane.f32.xlu0 %v460_v39  ;;  %v441_v54 = vpop.f32.mrf.mxu1 }
 0x3ef   :  { %v472_v50 = vsel %vm450_vm6, %v447_v48, -inf  ;;  %v3284_v55 = vadd.f32 %v441_v54, %v3281_v53 }
 0x3f2   :  { %467 = vmax.xlane.f32.xlu0 %v466_v49 }
 0x3f6   :  { %473 = vmax.xlane.f32.xlu0 %v472_v50 }
 0x3ff   :  { %553 = vrot.lane.b32.xlu1 %v3165_v40, %s3101_s22  ;;  %v469_v40 = vsel %vm450_vm6, %v3284_v55, -inf }
 0x403   :  { %549 = vrot.lane.b32.xlu1 %v3169_v41, %s3101_s22 }
 0x40c   :  { %551 = vrot.lane.b32.xlu0 %v3171_v42, %s3101_s22 }
 0x410   :  { %545 = vrot.lane.b32.xlu0 %v3177_v43, %s3101_s22 }
 0x427   :  { %470 = vmax.xlane.f32.xlu1 %v469_v40 }
 0x438   :  { %547 = vrot.lane.b32.xlu1 %v3179_v44, %s3101_s22 }
 0x43c   :  { %543 = vrot.lane.b32.xlu1 %v3185_v45, %s3101_s22 }
 0x46d   :  { %v456_v41 = vpop.xlane.xlu1 %455 }
 0x46e   :  { %v476_v42 = vsub.f32 %v417_v12, %v456_v41 }
 0x46f   :  { %v453_v43 = vpop.xlane.xlu0 %452 }
 0x470   :  { %v485_v56 = vmul.f32 1.442695, %v476_v42  ;;  %v475_v57 = vsub.f32 %v412_v15, %v453_v43 }
 0x472   :  { %2959 = vpow2.f32 %v485_v56  ;;  %v483_v58 = vmul.f32 1.442695, %v475_v57 }
 0x473   :  { %v459_v59 = vpop.xlane.xlu0 %458 }
 0x474   :  { %2961 = vpow2.f32 %v483_v58  ;;  %v477_v60 = vsub.f32 %v422_v24, %v459_v59 }
 0x476   :  { %v487_v61 = vmul.f32 1.442695, %v477_v60 }
 0x477   :  { %v465_v62 = vpop.xlane.xlu1 %464  ;;  %v462_v63 = vpop.xlane.xlu0 %461 }
 0x478   :  { %2963 = vpow2.f32 %v487_v61  ;;  %v479_v0 = vsub.f32 %v432_v34, %v465_v62  ;;  %v478_v1 = vsub.f32 %v427_v28, %v462_v63 }
 0x47a   :  { %v491_v44 = vmul.f32 1.442695, %v479_v0  ;;  %v489_v2 = vmul.f32 1.442695, %v478_v1 }
 0x47b   :  { %v554_v3 = vpop.permute.xlu1 %553  ;;  %v468_v45 = vpop.xlane.xlu0 %467 }
 0x47c   :  { %2965 = vpow2.f32 %v491_v44  ;;  %v480_v4 = vsub.f32 %v437_v35, %v468_v45  ;;  %2727 = vmatprep.subr.mxu0 %v554_v3 }
 0x47d   :  { %2967 = vpow2.f32 %v489_v2  ;;  %2728 = vmatpush3.msra.mxu0 %v554_v3 }
 0x47e   :  { %v493_v5 = vmul.f32 1.442695, %v480_v4 }
 0x47f   :  { %v3292_v6 = vpop.eup %2959  ;;  %v474_v8 = vpop.xlane.xlu0 %473 }
 0x480   :  { %2969 = vpow2.f32 %v493_v5  ;;  %v482_v9 = vsub.f32 %v447_v48, %v474_v8  ;;  %v502_v10 = vsel %vm450_vm6, %v3292_v6, 0.0  ;;  %v550_v17 = vpop.permute.xlu1 %549  ;;  %v727_v5 = vld [vmem:[#allocation2 + $0xd0] sm:$0xff]  ;;  %v725_v8 = vld [vmem:[#allocation2 + $0xc0] sm:$0xff] }
 0x481   :  { %v2962_v12 = vpop.eup %2961  ;;  %503 = vadd.xlane.f32.xlu0 %v502_v10  ;;  %2755 = vmatprep.subr.mxu1 %v727_v5 }
 0x482   :  { %v497_v13 = vmul.f32 1.442695, %v482_v9  ;;  %v499_v14 = vsel %vm450_vm6, %v2962_v12, 0.0  ;;  %2756 = vmatpush3.msra.mxu1 %v727_v5  ;;  %v724_v9 = vld [vmem:[#allocation2 + $0xb8] sm:$0xff] }
 0x483   :  { %500 = vadd.xlane.f32.xlu1 %v499_v14  ;;  %v552_v15 = vpop.permute.xlu0 %551 }
 0x484   :  { %2971 = vpow2.f32 %v497_v13  ;;  %2729 = vmatprep.subr.mxu0 %v552_v15 }
 0x485   :  { %v3297_v16 = vpop.eup %2963  ;;  %2730 = vmatpush3.msra.mxu0 %v552_v15 }
 0x486   :  { %2731 = vmatprep.subr.mxu0 %v550_v17  ;;  %v505_v18 = vsel %vm450_vm6, %v3297_v16, 0.0 }
 0x487   :  { %506 = vadd.xlane.f32.xlu1 %v505_v18  ;;  %2732 = vmatpush3.msra.mxu0 %v550_v17  ;;  %v546_v39 = vpop.permute.xlu0 %545 }
 0x489   :  { %v3301_v19 = vpop.eup %2965 }
 0x48a   :  { %v2968_v21 = vpop.eup %2967  ;;  %v511_v23 = vsel %vm450_vm6, %v3301_v19, 0.0 }
 0x48b   :  { %512 = vadd.xlane.f32.xlu1 %v511_v23  ;;  %v508_v24 = vsel %vm450_vm6, %v2968_v21, 0.0 }
 0x48c   :  { %509 = vadd.xlane.f32.xlu0 %v508_v24 }
 0x48d   :  { %v3306_v25 = vpop.eup %2969 }
 0x48e   :  { %v514_v26 = vsel %vm450_vm6, %v3306_v25, 0.0 }
 0x490   :  { %515 = vadd.xlane.f32.xlu0 %v514_v26 }
 0x491   :  { %v3310_v28 = vpop.eup %2971 }
 0x492   :  { %v520_v29 = vsel %vm450_vm6, %v3310_v28, 0.0 }
 0x494   :  { %521 = vadd.xlane.f32.xlu0 %v520_v29 }
 0x4aa   :  { %541 = vrot.lane.b32.xlu0 %v3147_v36, %s3101_s22 }
 0x4b0   :  { %v471_v31 = vpop.xlane.xlu1 %470 }
 0x4b1   :  { %v481_v34 = vsub.f32 %v3284_v55, %v471_v31 }
 0x4b3   :  { %v495_v35 = vmul.f32 1.442695, %v481_v34 }
 0x4b4   :  { %v548_v37 = vpop.permute.xlu1 %547 }
 0x4b5   :  { %2973 = vpow2.f32 %v495_v35  ;;  %2733 = vmatprep.subr.mxu0 %v548_v37 }
 0x4b6   :  { %2734 = vmatpush3.msra.mxu0 %v548_v37 }
 0x4b7   :  { %2735 = vmatprep.subr.mxu0 %v546_v39 }
 0x4b8   :  { %v544_v47 = vpop.permute.xlu1 %543  ;;  %2736 = vmatpush3.msra.mxu0 %v546_v39  ;;  %v2432_v39 = vld [vmem:[#allocation2 + $0xd8] ss:$0 sm:$0xff] }
 0x4b9   :  { %2737 = vmatprep.subr.mxu0 %v544_v47 }
 0x4ba   :  { %2738 = vmatpush3.msra.mxu0 %v544_v47 }
 0x4c2   :  { %v2974_v48 = vpop.eup %2973 }
 0x4c3   :  { %v517_v49 = vsel %vm450_vm6, %v2974_v48, 0.0 }
 0x4c4   :  { %518 = vadd.xlane.f32.xlu1 %v517_v49 }
 0x4d5   :  { %539 = vrot.lane.b32.xlu1 %v3149_v38, %s3101_s22 }
 0x50a   :  { %v504_v50 = vpop.xlane.xlu0 %503 }
 0x50c   :  { %v501_v36 = vpop.xlane.xlu1 %500 }
 0x50d   :  { %2975 = vrcp.f32 %v501_v36 }
 0x50e   :  { %2977 = vrcp.f32 %v504_v50 }
 0x510   :  { %v507_v42 = vpop.xlane.xlu1 %506 }
 0x511   :  { %2979 = vrcp.f32 %v507_v42 }
 0x514   :  { %v513_v43 = vpop.xlane.xlu1 %512 }
 0x515   :  { %v510_v51 = vpop.xlane.xlu0 %509 }
 0x516   :  { %2981 = vrcp.f32 %v510_v51 }
 0x517   :  { %2983 = vrcp.f32 %v513_v43 }
 0x519   :  { %v516_v52 = vpop.xlane.xlu0 %515 }
 0x51a   :  { %v2976_v54 = vpop.eup %2975  ;;  %2985 = vrcp.f32 %v516_v52 }
 0x51b   :  { %v531_v55 = vmul.f32 %v2976_v54, %v2962_v12  ;;  %v2978_v56 = vpop.eup %2977 }
 0x51c   :  { %v532_v59 = vmul.f32 %v2978_v56, %v3292_v6  ;;  %v726_v6 = vld [vmem:[#allocation2 + $0xc8] sm:$0xff] }
 0x51d   :  { %v522_v40 = vpop.xlane.xlu0 %521  ;;  %2743 = vmatprep.mubr.msk.f32.mxu0 %vm450_vm6, %v531_v55  ;;  %2757 = vmatprep.subr.mxu1 %v726_v6 }
 0x51e   :  { %2987 = vrcp.f32 %v522_v40  ;;  %v2980_v57 = vpop.eup %2979  ;;  %2758 = vmatpush3.msra.mxu1 %v726_v6 }
 0x51f   :  { %v533_v61 = vmul.f32 %v2980_v57, %v3297_v16  ;;  %2759 = vmatprep.subr.mxu1 %v725_v8 }
 0x520   :  { %2760 = vmatpush3.msra.mxu1 %v725_v8  ;;  %v2435_v8 = vld [vmem:[#allocation2 + $0xe0] ss:$0 sm:$0xff] }
 0x521   :  { %v542_v41 = vpop.permute.xlu0 %541  ;;  %2761 = vmatprep.subr.mxu1 %v724_v9 }
 0x522   :  { %2739 = vmatprep.subr.mxu0 %v542_v41  ;;  %2762 = vmatpush3.msra.mxu1 %v724_v9 }
 0x523   :  { %2740 = vmatpush3.msra.mxu0 %v542_v41  ;;  %v2982_v60 = vpop.eup %2981 }
 0x524   :  { %v2984_v62 = vpop.eup %2983  ;;  %v534_v63 = vmul.f32 %v2982_v60, %v2968_v21  ;;  %v858_v60 = vld [vmem:[#allocation2 + $0xf8] sm:$0xff] }
 0x525   :  { %v535_v1 = vmul.f32 %v2984_v62, %v3301_v19  ;;  %v956_v62 = vld [vmem:[#allocation2 + $0x150] sm:$0xff] }
 0x526   :  { %2777 = vmatprep.subr.mxu1 %v956_v62 }
 0x527   :  { %v2986_v0 = vpop.eup %2985 }
 0x528   :  { %v536_v2 = vmul.f32 %v2986_v0, %v3306_v25  ;;  %v954_v0 = vld [vmem:[#allocation2 + $0x140] sm:$0xff] }
 0x52b   :  { %v2988_v44 = vpop.eup %2987 }
 0x52c   :  { %v538_v4 = vmul.f32 %v2988_v44, %v3310_v28 }
 0x54d   :  { %v519_v38 = vpop.xlane.xlu1 %518 }
 0x54e   :  { %2989 = vrcp.f32 %v519_v38 }
 0x551   :  { %v540_v58 = vpop.permute.xlu1 %539 }
 0x552   :  { %2741 = vmatprep.subr.mxu0 %v540_v58 }
 0x553   :  { %2742 = vmatpush3.msra.mxu0 %v540_v58 }
 0x554   :  { %2744 = vmatmul.mubr.msk.f32.vlgmr.msra.gmra.mxu0 %vm450_vm6, %v532_v59  ;;  %v860_v59 = vld [vmem:[#allocation2 + $0x108] sm:$0xff] }
 0x555   :  { %2746 = vmatprep.mubr.msk.f32.mxu0 %vm450_vm6, %v533_v61  ;;  %2766 = vmatprep.subr.mxu0 %v860_v59  ;;  %v857_v61 = vld [vmem:[#allocation2 + $0xf0] sm:$0xff] }
 0x556   :  { %2767 = vmatpush3.msra.mxu0 %v860_v59  ;;  %v1086_v59 = vld [vmem:[#allocation2 + $0x178] sm:$0xff] }
 0x558   :  { %2747 = vmatmul.mubr.msk.f32.gmra.mxu0 %vm450_vm6, %v534_v63  ;;  %v955_v63 = vld [vmem:[#allocation2 + $0x148] sm:$0xff] }
 0x559   :  { %2749 = vmatprep.mubr.msk.f32.mxu0 %vm450_vm6, %v535_v1  ;;  %v953_v1 = vld [vmem:[#allocation2 + $0x138] sm:$0xff] }
 0x55b   :  { %v2990_v3 = vpop.eup %2989 }
 0x55c   :  { %2750 = vmatmul.mubr.msk.f32.gmra.mxu0 %vm450_vm6, %v536_v2  ;;  %v537_v45 = vmul.f32 %v2990_v3, %v2974_v48 }
 0x55e   :  { %2752 = vmatprep.mubr.msk.f32.mxu0 %vm450_vm6, %v537_v45 }
 0x560   :  { %2753 = vmatmul.mubr.msk.f32.gmra.mxu0 %vm450_vm6, %v538_v4 }
 0x614   :  { %v2745_v10 = vpop.f32.mrf.mxu0 }
 0x616   :  { %v653_v12 = vpop.f32.mrf.mxu0 }
 0x618   :  { %v2748_v13 = vpop.f32.mrf.mxu0 }
 0x619   :  { %696 = vrot.lane.b32.xlu1 %v2748_v13, %s3093_s13 }
 0x61a   :  { %v663_v14 = vpop.f32.mrf.mxu0 }
 0x61b   :  { %694 = vrot.lane.b32.xlu0 %v663_v14, %s3093_s13 }
 0x61c   :  { %v2751_v15 = vpop.f32.mrf.mxu0 }
 0x61d   :  { %704 = vrot.lane.b32.xlu1 %v2751_v15, %s3102_s23 }
 0x61e   :  { %v673_v16 = vpop.f32.mrf.mxu0 }
 0x61f   :  { %702 = vrot.lane.b32.xlu0 %v673_v16, %s3102_s23 }
 0x620   :  { %v2754_v17 = vpop.f32.mrf.mxu0 }
 0x621   :  { %712 = vrot.lane.b32.xlu1 %v2754_v17, %s3103_s24 }
 0x622   :  { %v683_v18 = vpop.f32.mrf.mxu0 }
 0x623   :  { %710 = vrot.lane.b32.xlu0 %v683_v18, %s3103_s24  ;;  %v952_v18 = vld [vmem:[#allocation2 + $0x130] sm:$0xff] }
 0x68b   :  { %v697_v19 = vpop.permute.xlu1 %696 }
 0x68c   :  { %v717_v28 = vsel %vm304_vm3, %v2745_v10, %v697_v19  ;;  %v2436_v10 = vld [vmem:[#allocation2 + $0xe8] ss:$0 sm:$0xff] }
 0x68d   :  { %v695_v21 = vpop.permute.xlu0 %694  ;;  %v951_v19 = vld [vmem:[#allocation2 + $0x128] sm:$0xff] }
 0x68e   :  { %v716_v25 = vsel %vm304_vm3, %v653_v12, %v695_v21  ;;  %v950_v21 = vld [vmem:[#allocation2 + $0x120] sm:$0xff] }
 0x68f   :  { %v705_v23 = vpop.permute.xlu1 %704 }
 0x690   :  { %v720_v34 = vsel %vm718_vm13, %v717_v28, %v705_v23  ;;  %v949_v23 = vld [vmem:[#allocation2 + $0x118] sm:$0xff] }
 0x691   :  { %v703_v24 = vpop.permute.xlu0 %702 }
 0x692   :  { %v719_v29 = vsel %vm718_vm13, %v716_v25, %v703_v24  ;;  %v2437_v24 = vld [vmem:[#allocation2 + $0x110] ss:$0 sm:$0xff] }
 0x693   :  { %v713_v26 = vpop.permute.xlu1 %712 }
 0x694   :  { %v723_v37 = vsel %vm721_vm14, %v720_v34, %v713_v26 }
 0x695   :  { %v711_v31 = vpop.permute.xlu0 %710 }
 0x696   :  { %v722_v35 = vsel %vm721_vm14, %v719_v29, %v711_v31 }
 0x697   :  { %2763 = vmatprep.mubr.msk.f32.mxu1 %vm178_vm2, %v722_v35  ;;  %v2440_v35 = vld [vmem:[#allocation2 + $0x158] ss:$0 sm:$0xff] }
 0x698   :  { %2764 = vmatmul.mubr.msk.f32.vlgmr.msra.gmra.mxu1 %vm178_vm2, %v723_v37 }
 0x699   :  { %2778 = vmatpush3.msra.mxu1 %v956_v62 }
 0x69a   :  { %2779 = vmatprep.subr.mxu1 %v955_v63 }
 0x69b   :  { %2780 = vmatpush3.msra.mxu1 %v955_v63 }
 0x69c   :  { %2781 = vmatprep.subr.mxu1 %v954_v0 }
 0x69d   :  { %2782 = vmatpush3.msra.mxu1 %v954_v0 }
 0x69e   :  { %2783 = vmatprep.subr.mxu1 %v953_v1 }
 0x69f   :  { %2784 = vmatpush3.msra.mxu1 %v953_v1 }
 0x6a0   :  { %2785 = vmatprep.subr.mxu1 %v952_v18 }
 0x6a1   :  { %2786 = vmatpush3.msra.mxu1 %v952_v18 }
 0x6a2   :  { %2787 = vmatprep.subr.mxu1 %v951_v19 }
 0x6a3   :  { %2788 = vmatpush3.msra.mxu1 %v951_v19 }
 0x6a4   :  { %2789 = vmatprep.subr.mxu1 %v950_v21 }
 0x6a5   :  { %2790 = vmatpush3.msra.mxu1 %v950_v21 }
 0x6a6   :  { %2791 = vmatprep.subr.mxu1 %v949_v23 }
 0x6a7   :  { %2792 = vmatpush3.msra.mxu1 %v949_v23 }
 0x758   :  { %v2765_v47 = vpop.f32.mrf.mxu1 }
 0x759   :  { %v811_v48 = vadd.f32 %v2765_v47, %v2432_v39 }
 0x75a   :  { %v805_v49 = vpop.f32.mrf.mxu1 }
 0x75b   :  { %v806_v36 = vadd.f32 %v2432_v39, %v805_v49  ;;  %v815_v50 = vadd.f32 %v811_v48, %v3141_v33 }
 0x75d   :  { %v821_v51 = vsel %vm178_vm2, %v815_v50, 0.0  ;;  %v814_v52 = vadd.f32 %v806_v36, %v3139_v32  ;;  %v859_v32 = vld [vmem:[#allocation2 + $0x100] sm:$0xff] }
 0x75e   :  { %822 = vadd.xlane.f32.xlu1 %v821_v51  ;;  %2768 = vmatprep.subr.mxu0 %v859_v32 }
 0x75f   :  { %v818_v54 = vsel %vm178_vm2, %v814_v52, 0.0  ;;  %2769 = vmatpush3.msra.mxu0 %v859_v32  ;;  %v1085_v32 = vld [vmem:[#allocation2 + $0x170] sm:$0xff] }
 0x760   :  { %819 = vadd.xlane.f32.xlu0 %v818_v54  ;;  %2770 = vmatprep.subr.mxu0 %v858_v60 }
 0x761   :  { %2771 = vmatpush3.msra.mxu0 %v858_v60 }
 0x762   :  { %2772 = vmatprep.subr.mxu0 %v857_v61 }
 0x763   :  { %2773 = vmatpush3.msra.mxu0 %v857_v61 }
 0x7e7   :  { %v823_v55 = vpop.xlane.xlu1 %822 }
 0x7e8   :  { %v826_v40 = vmul.f32 0.03125, %v823_v55 }
 0x7e9   :  { %v820_v41 = vpop.xlane.xlu0 %819 }
 0x7ea   :  { %v825_v42 = vmul.f32 0.03125, %v820_v41  ;;  %v828_v43 = vsub.f32 %v815_v50, %v826_v40 }
 0x7ec   :  { %v827_v38 = vsub.f32 %v814_v52, %v825_v42  ;;  %v830_v58 = vmul.f32 %v828_v43, %v828_v43 }
 0x7ee   :  { %v829_v56 = vmul.f32 %v827_v38, %v827_v38  ;;  %v834_v33 = vsel %vm178_vm2, %v830_v58, 0.0  ;;  %v1088_v58 = vld [vmem:[#allocation2 + $0x188] sm:$0xff] }
 0x7ef   :  { %2796 = vmatprep.subr.mxu0 %v1088_v58 }
 0x7f0   :  { %v831_v57 = vsel %vm178_vm2, %v829_v56, 0.0 }
 0x7f1   :  { %832 = vadd.xlane.f32.xlu0 %v831_v57 }
 0x7f5   :  { %835 = vadd.xlane.f32.xlu0 %v834_v33  ;;  %v1087_v33 = vld [vmem:[#allocation2 + $0x180] sm:$0xff] }
 0x87a   :  { %v833_v44 = vpop.xlane.xlu0 %832 }
 0x87b   :  { %v837_v2 = vmul.f32 0.03125, %v833_v44 }
 0x87d   :  { %v839_v3 = vadd.f32 1e-05, %v837_v2  ;;  %v2443_v2 = vld [vmem:[#allocation2 + $0x160] ss:$0 sm:$0xff] }
 0x87e   :  { %v836_v45 = vpop.xlane.xlu0 %835 }
 0x87f   :  { %2991 = vrsqrt.f32 %v839_v3  ;;  %v838_v4 = vmul.f32 0.03125, %v836_v45 }
 0x881   :  { %v840_v5 = vadd.f32 1e-05, %v838_v4 }
 0x883   :  { %2993 = vrsqrt.f32 %v840_v5 }
 0x88c   :  { %v2992_v6 = vpop.eup %2991 }
 0x88d   :  { %v843_v9 = vmul.f32 %v2992_v6, %v827_v38  ;;  %v2444_v6 = vld [vmem:[#allocation2 + $0x168] ss:$0 sm:$0xff] }
 0x88f   :  { %v849_v12 = vmul.f32 %v2435_v8, %v843_v9 }
 0x890   :  { %v2994_v13 = vpop.eup %2993 }
 0x891   :  { %v844_v14 = vmul.f32 %v2994_v13, %v828_v43  ;;  %v855_v15 = vadd.f32 %v2436_v10, %v849_v12  ;;  %v2445_v12 = vld [vmem:[#allocation2 + $0x190] ss:$0 sm:$0xff] }
 0x893   :  { %v850_v16 = vmul.f32 %v2435_v8, %v844_v14  ;;  %2774 = vmatprep.mubr.msk.f32.mxu0 %vm178_vm2, %v855_v15 }
 0x895   :  { %v856_v17 = vadd.f32 %v2436_v10, %v850_v16 }
 0x897   :  { %2775 = vmatmul.mubr.msk.f32.vlgmr.msra.gmra.mxu0 %vm178_vm2, %v856_v17 }
 0x898   :  { %2797 = vmatpush3.msra.mxu0 %v1088_v58 }
 0x899   :  { %2798 = vmatprep.subr.mxu0 %v1087_v33 }
 0x89a   :  { %2799 = vmatpush3.msra.mxu0 %v1087_v33 }
 0x89b   :  { %2800 = vmatprep.subr.mxu0 %v1086_v59 }
 0x89c   :  { %2801 = vmatpush3.msra.mxu0 %v1086_v59 }
 0x89d   :  { %2802 = vmatprep.subr.mxu0 %v1085_v32 }
 0x89e   :  { %2803 = vmatpush3.msra.mxu0 %v1085_v32 }
 0x957   :  { %v2776_v25 = vpop.f32.mrf.mxu0 }
 0x958   :  { %v944_v26 = vadd.f32 %v2776_v25, %v2437_v24 }
 0x959   :  { %v938_v28 = vpop.f32.mrf.mxu0 }
 0x95a   :  { %v939_v29 = vadd.f32 %v2437_v24, %v938_v28  ;;  %v948_v34 = vmax.f32 %v944_v26, 0.0 }
 0x95c   :  { %v947_v31 = vmax.f32 %v939_v29, 0.0 }
 0x95e   :  { %2793 = vmatprep.mubr.msk.f32.mxu1 %vm450_vm6, %v947_v31 }
 0x95f   :  { %2794 = vmatmul.mubr.msk.f32.vlgmr.msra.gmra.mxu1 %vm450_vm6, %v948_v34 }
 0xa1f   :  { %v2795_v37 = vpop.f32.mrf.mxu1 }
 0xa20   :  { %v1040_v39 = vadd.f32 %v2795_v37, %v2440_v35 }
 0xa21   :  { %v1034_v47 = vpop.f32.mrf.mxu1 }
 0xa22   :  { %v1035_v48 = vadd.f32 %v2440_v35, %v1034_v47  ;;  %v1044_v49 = vadd.f32 %v1040_v39, %v856_v17 }
 0xa24   :  { %v1050_v36 = vsel %vm178_vm2, %v1044_v49, 0.0  ;;  %v1043_v50 = vadd.f32 %v1035_v48, %v855_v15 }
 0xa25   :  { %1051 = vadd.xlane.f32.xlu0 %v1050_v36 }
 0xa26   :  { %v1047_v51 = vsel %vm178_vm2, %v1043_v50, 0.0 }
 0xa27   :  { %1048 = vadd.xlane.f32.xlu1 %v1047_v51 }
 0xaae   :  { %v1052_v52 = vpop.xlane.xlu0 %1051 }
 0xaaf   :  { %v1054_v54 = vmul.f32 0.03125, %v1052_v52 }
 0xab0   :  { %v1049_v55 = vpop.xlane.xlu1 %1048 }
 0xab1   :  { %v1056_v40 = vsub.f32 %v1044_v49, %v1054_v54  ;;  %v1053_v41 = vmul.f32 0.03125, %v1049_v55 }
 0xab3   :  { %v1055_v42 = vsub.f32 %v1043_v50, %v1053_v41  ;;  %v1058_v43 = vmul.f32 %v1056_v40, %v1056_v40 }
 0xab5   :  { %v1062_v38 = vsel %vm178_vm2, %v1058_v43, 0.0  ;;  %v1057_v56 = vmul.f32 %v1055_v42, %v1055_v42 }
 0xab6   :  { %1063 = vadd.xlane.f32.xlu0 %v1062_v38 }
 0xab7   :  { %v1059_v57 = vsel %vm178_vm2, %v1057_v56, 0.0 }
 0xab8   :  { %1060 = vadd.xlane.f32.xlu1 %v1059_v57 }
 0xb3f   :  { %v1064_v60 = vpop.xlane.xlu0 %1063 }
 0xb40   :  { %v1066_v61 = vmul.f32 0.03125, %v1064_v60 }
 0xb41   :  { %v1061_v62 = vpop.xlane.xlu1 %1060 }
 0xb42   :  { %v1068_v63 = vadd.f32 1e-05, %v1066_v61  ;;  %v1065_v0 = vmul.f32 0.03125, %v1061_v62 }
 0xb44   :  { %2995 = vrsqrt.f32 %v1068_v63  ;;  %v1067_v1 = vadd.f32 1e-05, %v1065_v0 }
 0xb46   :  { %2997 = vrsqrt.f32 %v1067_v1 }
 0xb51   :  { %v2996_v44 = vpop.eup %2995 }
 0xb52   :  { %v1072_v3 = vmul.f32 %v2996_v44, %v1056_v40 }
 0xb53   :  { %v2998_v45 = vpop.eup %2997 }
 0xb54   :  { %v1071_v4 = vmul.f32 %v2998_v45, %v1055_v42  ;;  %v1078_v5 = vmul.f32 %v2443_v2, %v1072_v3 }
 0xb56   :  { %v1077_v8 = vmul.f32 %v2443_v2, %v1071_v4  ;;  %v3363_v10 = vadd.f32 %v2444_v6, %v1078_v5 }
 0xb58   :  { %v3361_v9 = vadd.f32 %v2444_v6, %v1077_v8 }
 0xb5a   :  { %2804 = vmatprep.mubr.msk.f32.mxu0 %vm178_vm2, %v3361_v9 }
 0xb5b   :  { %2805 = vmatmul.mubr.msk.f32.vlgmr.msra.gmra.mxu0 %vm178_vm2, %v3363_v10 }
 0xc1b   :  { %v2806_v13 = vpop.f32.mrf.mxu0 }
 0xc1c   :  { %v3369_v14 = vadd.f32 %v2806_v13, %v2445_v12 }
 0xc1d   :  { %v1166_v15 = vpop.f32.mrf.mxu0 }
 0xc1e   :  { %v3371_v16 = vadd.f32 %v2445_v12, %v1166_v15  ;;  %1191 = vrot.lane.b32.xlu1 %v3369_v14, %s3097_s1  ;;  %v1196_v47 = vmul.f32 0.35355338, %v3369_v14 }
 0xc20   :  { %1189 = vrot.lane.b32.xlu0 %v3371_v16, %s3097_s1  ;;  %v1195_v17 = vmul.f32 0.35355338, %v3371_v16 }
 0xc22   :  { %1185 = vrot.lane.b32.xlu1 %v3369_v14, %s3096_s0  ;;  %2823 = vmatprep.mubr.msk.f32.mxu0 %vm304_vm3, %v1195_v17 }
 0xc24   :  { %1179 = vrot.lane.b32.xlu0 %v3369_v14, %s3098_s20 }
 0xc26   :  { %1183 = vrot.lane.b32.xlu1 %v3371_v16, %s3096_s0 }
 0xc2a   :  { %1177 = vrot.lane.b32.xlu1 %v3371_v16, %s3098_s20 }
 0xc90   :  { %v3387_v18 = vpop.permute.xlu1 %1191 }
 0xc91   :  { %1217 = vrot.lane.b32.xlu0 %v3387_v18, %s3099_s21  ;;  %v1202_v52 = vmul.f32 0.35355338, %v3387_v18 }
 0xc92   :  { %v3391_v19 = vpop.permute.xlu0 %1189 }
 0xc93   :  { %1215 = vrot.lane.b32.xlu1 %v3391_v19, %s3099_s21  ;;  %v1201_v51 = vmul.f32 0.35355338, %v3391_v19 }
 0xc94   :  { %v3395_v21 = vpop.permute.xlu1 %1185 }
 0xc95   :  { %1213 = vrot.lane.b32.xlu0 %v3395_v21, %s3099_s21  ;;  %v1200_v50 = vmul.f32 0.35355338, %v3395_v21 }
 0xc96   :  { %v3399_v23 = vpop.permute.xlu0 %1179 }
 0xc97   :  { %v1198_v49 = vmul.f32 0.35355338, %v3399_v23 }
 0xc98   :  { %v3401_v24 = vpop.permute.xlu1 %1183 }
 0xc99   :  { %1211 = vrot.lane.b32.xlu1 %v3401_v24, %s3099_s21  ;;  %1209 = vrot.lane.b32.xlu0 %v3399_v23, %s3099_s21  ;;  %v1199_v36 = vmul.f32 0.35355338, %v3401_v24 }
 0xc9c   :  { %v3407_v25 = vpop.permute.xlu1 %1177 }
 0xc9d   :  { %1207 = vrot.lane.b32.xlu1 %v3407_v25, %s3099_s21  ;;  %1205 = vrot.lane.b32.xlu0 %v3369_v14, %s3099_s21  ;;  %v1197_v48 = vmul.f32 0.35355338, %v3407_v25 }
 0xca1   :  { %1203 = vrot.lane.b32.xlu1 %v3371_v16, %s3099_s21 }
 0xd03   :  { %v1218_v26 = vpop.permute.xlu0 %1217 }
 0xd04   :  { %2807 = vmatprep.subr.msk.mxu0 %vm304_vm3, %v1218_v26 }
 0xd05   :  { %v1216_v28 = vpop.permute.xlu1 %1215  ;;  %2808 = vmatpush3.xpose.msk.msra.mxu0 %vm304_vm3, %v1218_v26 }
 0xd06   :  { %2809 = vmatprep.subr.msk.mxu0 %vm304_vm3, %v1216_v28 }
 0xd07   :  { %v1214_v29 = vpop.permute.xlu0 %1213 }
 0xd09   :  { %2810 = vmatpush3.xpose.msk.msra.mxu0 %vm304_vm3, %v1216_v28 }
 0xd0a   :  { %2811 = vmatprep.subr.msk.mxu0 %vm304_vm3, %v1214_v29 }
 0xd0b   :  { %v1212_v31 = vpop.permute.xlu1 %1211  ;;  %v1210_v34 = vpop.permute.xlu0 %1209 }
 0xd0d   :  { %2812 = vmatpush3.xpose.msk.msra.mxu0 %vm304_vm3, %v1214_v29 }
 0xd0e   :  { %2813 = vmatprep.subr.msk.mxu0 %vm304_vm3, %v1212_v31 }
 0xd0f   :  { %v1208_v35 = vpop.permute.xlu1 %1207  ;;  %v1206_v37 = vpop.permute.xlu0 %1205 }
 0xd11   :  { %2814 = vmatpush3.xpose.msk.msra.mxu0 %vm304_vm3, %v1212_v31 }
 0xd12   :  { %2815 = vmatprep.subr.msk.mxu0 %vm304_vm3, %v1210_v34 }
 0xd13   :  { %v1204_v39 = vpop.permute.xlu1 %1203 }
 0xd15   :  { %2816 = vmatpush3.xpose.msk.msra.mxu0 %vm304_vm3, %v1210_v34 }
 0xd16   :  { %2817 = vmatprep.subr.msk.mxu0 %vm304_vm3, %v1208_v35 }
 0xd19   :  { %2818 = vmatpush3.xpose.msk.msra.mxu0 %vm304_vm3, %v1208_v35 }
 0xd1a   :  { %2819 = vmatprep.subr.msk.mxu0 %vm304_vm3, %v1206_v37 }
 0xd1d   :  { %2820 = vmatpush3.xpose.msk.msra.mxu0 %vm304_vm3, %v1206_v37 }
 0xd1e   :  { %2821 = vmatprep.subr.msk.mxu0 %vm304_vm3, %v1204_v39 }
 0xd21   :  { %2822 = vmatpush3.xpose.msk.msra.mxu0 %vm304_vm3, %v1204_v39 }
 0xd24   :  { %2824 = vmatmul.mubr.msk.f32.vlgmr.msra.gmra.mxu0 %vm304_vm3, %v1196_v47 }
 0xd25   :  { %2826 = vmatprep.mubr.msk.f32.mxu0 %vm304_vm3, %v1197_v48 }
 0xd28   :  { %2827 = vmatmul.mubr.msk.f32.gmra.mxu0 %vm304_vm3, %v1198_v49 }
 0xd29   :  { %2829 = vmatprep.mubr.msk.f32.mxu0 %vm304_vm3, %v1199_v36 }
 0xd2c   :  { %2830 = vmatmul.mubr.msk.f32.gmra.mxu0 %vm304_vm3, %v1200_v50 }
 0xd2d   :  { %2832 = vmatprep.mubr.msk.f32.mxu0 %vm304_vm3, %v1201_v51 }
 0xd30   :  { %2833 = vmatmul.mubr.msk.f32.gmra.mxu0 %vm304_vm3, %v1202_v52 }
 0xde4   :  { %v2825_v54 = vpop.f32.mrf.mxu0 }
 0xde5   :  { %v1331_v55 = vadd.f32 %v2825_v54, %v3236_v7 }
 0xde6   :  { %v1325_v40 = vpop.f32.mrf.mxu0 }
 0xde7   :  { %v1326_v41 = vadd.f32 %v1325_v40, %v3239_v11  ;;  %v1367_v42 = vsel %vm450_vm6, %v1331_v55, -inf }
 0xde8   :  { %1368 = vmax.xlane.f32.xlu1 %v1367_v42  ;;  %v2828_v43 = vpop.f32.mrf.mxu0 }
 0xde9   :  { %v1364_v38 = vsel %vm450_vm6, %v1326_v41, -inf  ;;  %v1341_v33 = vadd.f32 %v2828_v43, %v3251_v22 }
 0xdea   :  { %v1335_v56 = vpop.f32.mrf.mxu0  ;;  %1365 = vmax.xlane.f32.xlu0 %v1364_v38 }
 0xdeb   :  { %v1336_v57 = vadd.f32 %v1335_v56, %v3247_v20  ;;  %v1373_v63 = vsel %vm450_vm6, %v1341_v33, -inf }
 0xdec   :  { %v2831_v58 = vpop.f32.mrf.mxu0 }
 0xded   :  { %v1370_v59 = vsel %vm450_vm6, %v1336_v57, -inf  ;;  %v1351_v61 = vadd.f32 %v2831_v58, %v3259_v30 }
 0xdee   :  { %v1345_v32 = vpop.f32.mrf.mxu0  ;;  %1371 = vmax.xlane.f32.xlu0 %v1370_v59 }
 0xdef   :  { %v1346_v60 = vadd.f32 %v1345_v32, %v3255_v27  ;;  %v1379_v1 = vsel %vm450_vm6, %v1351_v61, -inf }
 0xdf0   :  { %v2834_v0 = vpop.f32.mrf.mxu0 }
 0xdf1   :  { %v1376_v62 = vsel %vm450_vm6, %v1346_v60, -inf  ;;  %v1361_v20 = vadd.f32 %v2834_v0, %v3266_v46 }
 0xdf2   :  { %1377 = vmax.xlane.f32.xlu1 %v1376_v62  ;;  %1374 = vmax.xlane.f32.xlu0 %v1373_v63  ;;  %v1355_v27 = vpop.f32.mrf.mxu0 }
 0xdf3   :  { %v1385_v22 = vsel %vm450_vm6, %v1361_v20, -inf  ;;  %v3468_v30 = vadd.f32 %v1355_v27, %v3281_v53 }
 0xdf5   :  { %v1382_v46 = vsel %vm450_vm6, %v3468_v30, -inf }
 0xdf6   :  { %1380 = vmax.xlane.f32.xlu0 %v1379_v1 }
 0xdfa   :  { %1386 = vmax.xlane.f32.xlu0 %v1385_v22 }
 0xe03   :  { %1466 = vrot.lane.b32.xlu1 %v3387_v18, %s3101_s22 }
 0xe07   :  { %1462 = vrot.lane.b32.xlu1 %v3395_v21, %s3101_s22 }
 0xe10   :  { %1464 = vrot.lane.b32.xlu0 %v3391_v19, %s3101_s22 }
 0xe14   :  { %1458 = vrot.lane.b32.xlu0 %v3399_v23, %s3101_s22 }
 0xe2b   :  { %1383 = vmax.xlane.f32.xlu1 %v1382_v46 }
 0xe3c   :  { %1460 = vrot.lane.b32.xlu1 %v3401_v24, %s3101_s22 }
 0xe40   :  { %1456 = vrot.lane.b32.xlu1 %v3407_v25, %s3101_s22 }
 0xe71   :  { %v1369_v44 = vpop.xlane.xlu1 %1368 }
 0xe72   :  { %v1389_v2 = vsub.f32 %v1331_v55, %v1369_v44 }
 0xe73   :  { %v1366_v3 = vpop.xlane.xlu0 %1365 }
 0xe74   :  { %v1398_v45 = vmul.f32 1.442695, %v1389_v2  ;;  %v1388_v4 = vsub.f32 %v1326_v41, %v1366_v3 }
 0xe76   :  { %2999 = vpow2.f32 %v1398_v45  ;;  %v1396_v5 = vmul.f32 1.442695, %v1388_v4 }
 0xe77   :  { %v1372_v6 = vpop.xlane.xlu0 %1371 }
 0xe78   :  { %3001 = vpow2.f32 %v1396_v5  ;;  %v1390_v53 = vsub.f32 %v1336_v57, %v1372_v6 }
 0xe7a   :  { %v1400_v8 = vmul.f32 1.442695, %v1390_v53 }
 0xe7b   :  { %v1378_v12 = vpop.xlane.xlu1 %1377  ;;  %v1375_v13 = vpop.xlane.xlu0 %1374 }
 0xe7c   :  { %3003 = vpow2.f32 %v1400_v8  ;;  %v1392_v15 = vsub.f32 %v1346_v60, %v1378_v12  ;;  %v1391_v17 = vsub.f32 %v1341_v33, %v1375_v13 }
 0xe7e   :  { %v1404_v18 = vmul.f32 1.442695, %v1392_v15  ;;  %v1402_v19 = vmul.f32 1.442695, %v1391_v17  ;;  %v1638_v17 = vld [vmem:[#allocation2 + $0x1b0] sm:$0xff] }
 0xe7f   :  { %v1467_v21 = vpop.permute.xlu1 %1466  ;;  %v1381_v23 = vpop.xlane.xlu0 %1380 }
 0xe80   :  { %3005 = vpow2.f32 %v1404_v18  ;;  %v1393_v24 = vsub.f32 %v1351_v61, %v1381_v23  ;;  %2835 = vmatprep.subr.mxu1 %v1467_v21  ;;  %v1637_v18 = vld [vmem:[#allocation2 + $0x1a8] sm:$0xff] }
 0xe81   :  { %3007 = vpow2.f32 %v1402_v19  ;;  %2836 = vmatpush3.msra.mxu1 %v1467_v21  ;;  %v1636_v19 = vld [vmem:[#allocation2 + $0x1a0] sm:$0xff]  ;;  %v1635_v21 = vld [vmem:[#allocation2 + $0x198] sm:$0xff] }
 0xe82   :  { %v1406_v25 = vmul.f32 1.442695, %v1393_v24 }
 0xe83   :  { %v3476_v26 = vpop.eup %2999  ;;  %v1387_v28 = vpop.xlane.xlu0 %1386 }
 0xe84   :  { %3009 = vpow2.f32 %v1406_v25  ;;  %v1395_v29 = vsub.f32 %v1361_v20, %v1387_v28  ;;  %v1415_v31 = vsel %vm450_vm6, %v3476_v26, 0.0  ;;  %v1463_v48 = vpop.permute.xlu1 %1462 }
 0xe85   :  { %v3002_v34 = vpop.eup %3001  ;;  %1416 = vadd.xlane.f32.xlu0 %v1415_v31 }
 0xe86   :  { %v1410_v35 = vmul.f32 1.442695, %v1395_v29  ;;  %v1412_v37 = vsel %vm450_vm6, %v3002_v34, 0.0 }
 0xe87   :  { %1413 = vadd.xlane.f32.xlu1 %v1412_v37  ;;  %v1465_v39 = vpop.permute.xlu0 %1464 }
 0xe88   :  { %3011 = vpow2.f32 %v1410_v35  ;;  %2837 = vmatprep.subr.mxu1 %v1465_v39 }
 0xe89   :  { %v3481_v47 = vpop.eup %3003  ;;  %2838 = vmatpush3.msra.mxu1 %v1465_v39 }
 0xe8a   :  { %2839 = vmatprep.subr.mxu1 %v1463_v48  ;;  %v1418_v49 = vsel %vm450_vm6, %v3481_v47, 0.0 }
 0xe8b   :  { %1419 = vadd.xlane.f32.xlu1 %v1418_v49  ;;  %2840 = vmatpush3.msra.mxu1 %v1463_v48  ;;  %v1459_v57 = vpop.permute.xlu0 %1458 }
 0xe8d   :  { %v3485_v36 = vpop.eup %3005 }
 0xe8e   :  { %v3008_v50 = vpop.eup %3007  ;;  %v1424_v51 = vsel %vm450_vm6, %v3485_v36, 0.0 }
 0xe8f   :  { %1425 = vadd.xlane.f32.xlu1 %v1424_v51  ;;  %v1421_v52 = vsel %vm450_vm6, %v3008_v50, 0.0 }
 0xe90   :  { %1422 = vadd.xlane.f32.xlu0 %v1421_v52 }
 0xe91   :  { %v3490_v54 = vpop.eup %3009 }
 0xe92   :  { %v1427_v55 = vsel %vm450_vm6, %v3490_v54, 0.0 }
 0xe94   :  { %1428 = vadd.xlane.f32.xlu0 %v1427_v55 }
 0xe95   :  { %v3494_v40 = vpop.eup %3011 }
 0xe96   :  { %v1433_v41 = vsel %vm450_vm6, %v3494_v40, 0.0 }
 0xe98   :  { %1434 = vadd.xlane.f32.xlu0 %v1433_v41 }
 0xeae   :  { %1454 = vrot.lane.b32.xlu0 %v3369_v14, %s3101_s22 }
 0xeb4   :  { %v1384_v42 = vpop.xlane.xlu1 %1383 }
 0xeb5   :  { %v1394_v43 = vsub.f32 %v3468_v30, %v1384_v42 }
 0xeb7   :  { %v1408_v38 = vmul.f32 1.442695, %v1394_v43 }
 0xeb8   :  { %v1461_v56 = vpop.permute.xlu1 %1460 }
 0xeb9   :  { %3013 = vpow2.f32 %v1408_v38  ;;  %2841 = vmatprep.subr.mxu1 %v1461_v56 }
 0xeba   :  { %2842 = vmatpush3.msra.mxu1 %v1461_v56 }
 0xebb   :  { %2843 = vmatprep.subr.mxu1 %v1459_v57 }
 0xebc   :  { %v1457_v58 = vpop.permute.xlu1 %1456  ;;  %2844 = vmatpush3.msra.mxu1 %v1459_v57 }
 0xebd   :  { %2845 = vmatprep.subr.mxu1 %v1457_v58 }
 0xebe   :  { %2846 = vmatpush3.msra.mxu1 %v1457_v58 }
 0xec6   :  { %v3014_v33 = vpop.eup %3013 }
 0xec7   :  { %v1430_v59 = vsel %vm450_vm6, %v3014_v33, 0.0 }
 0xec8   :  { %1431 = vadd.xlane.f32.xlu1 %v1430_v59 }
 0xed9   :  { %1452 = vrot.lane.b32.xlu1 %v3371_v16, %s3101_s22 }
 0xf0e   :  { %v1417_v32 = vpop.xlane.xlu0 %1416 }
 0xf10   :  { %v1414_v14 = vpop.xlane.xlu1 %1413 }
 0xf11   :  { %3015 = vrcp.f32 %v1414_v14 }
 0xf12   :  { %3017 = vrcp.f32 %v1417_v32 }
 0xf14   :  { %v1420_v1 = vpop.xlane.xlu1 %1419 }
 0xf15   :  { %3019 = vrcp.f32 %v1420_v1  ;;  %v1769_v1 = vld [vmem:[#allocation2 + $0x1e0] sm:$0xff] }
 0xf18   :  { %v1426_v22 = vpop.xlane.xlu1 %1425 }
 0xf19   :  { %v1423_v60 = vpop.xlane.xlu0 %1422 }
 0xf1a   :  { %3021 = vrcp.f32 %v1423_v60 }
 0xf1b   :  { %3023 = vrcp.f32 %v1426_v22  ;;  %v1768_v22 = vld [vmem:[#allocation2 + $0x1d8] sm:$0xff] }
 0xf1d   :  { %v1429_v61 = vpop.xlane.xlu0 %1428 }
 0xf1e   :  { %v3016_v62 = vpop.eup %3015  ;;  %3025 = vrcp.f32 %v1429_v61 }
 0xf1f   :  { %v1444_v63 = vmul.f32 %v3016_v62, %v3002_v34  ;;  %v3018_v27 = vpop.eup %3017 }
 0xf20   :  { %v1445_v44 = vmul.f32 %v3018_v27, %v3476_v26  ;;  %v1866_v27 = vld [vmem:[#allocation2 + $0x230] sm:$0xff] }
 0xf21   :  { %v1435_v0 = vpop.xlane.xlu0 %1434  ;;  %2851 = vmatprep.mubr.msk.f32.mxu1 %vm450_vm6, %v1444_v63  ;;  %2885 = vmatprep.subr.mxu0 %v1866_v27 }
 0xf22   :  { %3027 = vrcp.f32 %v1435_v0  ;;  %v3020_v30 = vpop.eup %3019  ;;  %2886 = vmatpush3.msra.mxu0 %v1866_v27 }
 0xf23   :  { %v1446_v3 = vmul.f32 %v3020_v30, %v3481_v47  ;;  %v1865_v30 = vld [vmem:[#allocation2 + $0x228] sm:$0xff] }
 0xf24   :  { %2887 = vmatprep.subr.mxu0 %v1865_v30 }
 0xf25   :  { %v1455_v20 = vpop.permute.xlu0 %1454  ;;  %2888 = vmatpush3.msra.mxu0 %v1865_v30 }
 0xf26   :  { %2847 = vmatprep.subr.mxu1 %v1455_v20 }
 0xf27   :  { %2848 = vmatpush3.msra.mxu1 %v1455_v20  ;;  %v3022_v2 = vpop.eup %3021 }
 0xf28   :  { %v3024_v45 = vpop.eup %3023  ;;  %v1447_v4 = vmul.f32 %v3022_v2, %v3008_v50  ;;  %v1862_v2 = vld [vmem:[#allocation2 + $0x210] sm:$0xff] }
 0xf29   :  { %v1448_v6 = vmul.f32 %v3024_v45, %v3485_v36 }
 0xf2b   :  { %v3026_v5 = vpop.eup %3025 }
 0xf2c   :  { %v1449_v8 = vmul.f32 %v3026_v5, %v3490_v54 }
 0xf2f   :  { %v3028_v53 = vpop.eup %3027 }
 0xf30   :  { %v1451_v15 = vmul.f32 %v3028_v53, %v3494_v40  ;;  %v2472_v40 = vld [vmem:[#allocation2 + $0x1b8] ss:$0 sm:$0xff] }
 0xf51   :  { %v1432_v16 = vpop.xlane.xlu1 %1431 }
 0xf52   :  { %3029 = vrcp.f32 %v1432_v16  ;;  %v1767_v16 = vld [vmem:[#allocation2 + $0x1d0] sm:$0xff] }
 0xf55   :  { %v1453_v46 = vpop.permute.xlu1 %1452 }
 0xf56   :  { %2849 = vmatprep.subr.mxu1 %v1453_v46 }
 0xf57   :  { %2850 = vmatpush3.msra.mxu1 %v1453_v46  ;;  %v1864_v46 = vld [vmem:[#allocation2 + $0x220] sm:$0xff] }
 0xf58   :  { %2852 = vmatmul.mubr.msk.f32.vlgmr.msra.gmra.mxu1 %vm450_vm6, %v1445_v44  ;;  %2863 = vmatprep.subr.mxu1 %v1638_v17  ;;  %v1863_v44 = vld [vmem:[#allocation2 + $0x218] sm:$0xff] }
 0xf59   :  { %2854 = vmatprep.mubr.msk.f32.mxu1 %vm450_vm6, %v1446_v3  ;;  %2864 = vmatpush3.msra.mxu1 %v1638_v17 }
 0xf5a   :  { %2865 = vmatprep.subr.mxu1 %v1637_v18  ;;  %2889 = vmatprep.subr.mxu0 %v1864_v46 }
 0xf5b   :  { %2866 = vmatpush3.msra.mxu1 %v1637_v18  ;;  %2890 = vmatpush3.msra.mxu0 %v1864_v46 }
 0xf5c   :  { %2855 = vmatmul.mubr.msk.f32.gmra.mxu1 %vm450_vm6, %v1447_v4  ;;  %2867 = vmatprep.subr.mxu1 %v1636_v19 }
 0xf5d   :  { %2857 = vmatprep.mubr.msk.f32.mxu1 %vm450_vm6, %v1448_v6  ;;  %2868 = vmatpush3.msra.mxu1 %v1636_v19 }
 0xf5e   :  { %2869 = vmatprep.subr.mxu1 %v1635_v21  ;;  %2891 = vmatprep.subr.mxu0 %v1863_v44 }
 0xf5f   :  { %v3030_v12 = vpop.eup %3029  ;;  %2870 = vmatpush3.msra.mxu1 %v1635_v21  ;;  %2892 = vmatpush3.msra.mxu0 %v1863_v44 }
 0xf60   :  { %2858 = vmatmul.mubr.msk.f32.gmra.mxu1 %vm450_vm6, %v1449_v8  ;;  %v1450_v13 = vmul.f32 %v3030_v12, %v3014_v33  ;;  %2893 = vmatprep.subr.mxu0 %v1862_v2  ;;  %v2475_v12 = vld [vmem:[#allocation2 + $0x1c0] ss:$0 sm:$0xff] }
 0xf61   :  { %2894 = vmatpush3.msra.mxu0 %v1862_v2  ;;  %v2484_v2 = vld [vmem:[#allocation2 + $0x248] ss:$0 sm:$0xff] }
 0xf62   :  { %2860 = vmatprep.mubr.msk.f32.mxu1 %vm450_vm6, %v1450_v13 }
 0xf64   :  { %2861 = vmatmul.mubr.msk.f32.gmra.mxu1 %vm450_vm6, %v1451_v15  ;;  %v2476_v15 = vld [vmem:[#allocation2 + $0x1c8] ss:$0 sm:$0xff] }
0x1018   :  { %v2853_v23 = vpop.f32.mrf.mxu1 }
0x101a   :  { %v1566_v24 = vpop.f32.mrf.mxu1 }
0x101c   :  { %v2856_v25 = vpop.f32.mrf.mxu1 }
0x101d   :  { %1609 = vrot.lane.b32.xlu1 %v2856_v25, %s3093_s13  ;;  %v1861_v25 = vld [vmem:[#allocation2 + $0x208] sm:$0xff] }
0x101e   :  { %v1576_v26 = vpop.f32.mrf.mxu1  ;;  %2895 = vmatprep.subr.mxu0 %v1861_v25 }
0x101f   :  { %1607 = vrot.lane.b32.xlu0 %v1576_v26, %s3093_s13  ;;  %2896 = vmatpush3.msra.mxu0 %v1861_v25  ;;  %v1860_v26 = vld [vmem:[#allocation2 + $0x200] sm:$0xff] }
0x1020   :  { %v2859_v28 = vpop.f32.mrf.mxu1  ;;  %2897 = vmatprep.subr.mxu0 %v1860_v26 }
0x1021   :  { %1617 = vrot.lane.b32.xlu1 %v2859_v28, %s3102_s23  ;;  %v1859_v28 = vld [vmem:[#allocation2 + $0x1f8] sm:$0xff]  ;;  %2898 = vmatpush3.msra.mxu0 %v1860_v26 }
0x1022   :  { %v1586_v29 = vpop.f32.mrf.mxu1  ;;  %2899 = vmatprep.subr.mxu0 %v1859_v28 }
0x1023   :  { %1615 = vrot.lane.b32.xlu0 %v1586_v29, %s3102_s23  ;;  %2900 = vmatpush3.msra.mxu0 %v1859_v28  ;;  %v2477_v29 = vld [vmem:[#allocation2 + $0x1f0] ss:$0 sm:$0xff] }
0x1024   :  { %v2862_v31 = vpop.f32.mrf.mxu1 }
0x1025   :  { %1625 = vrot.lane.b32.xlu1 %v2862_v31, %s3103_s24 }
0x1026   :  { %v1596_v34 = vpop.f32.mrf.mxu1 }
0x1027   :  { %1623 = vrot.lane.b32.xlu0 %v1596_v34, %s3103_s24 }
0x108f   :  { %v1610_v35 = vpop.permute.xlu1 %1609 }
0x1090   :  { %v1630_v36 = vsel %vm304_vm3, %v2853_v23, %v1610_v35 }
0x1091   :  { %v1608_v37 = vpop.permute.xlu0 %1607 }
0x1092   :  { %v1629_v48 = vsel %vm304_vm3, %v1566_v24, %v1608_v37 }
0x1093   :  { %v1618_v39 = vpop.permute.xlu1 %1617 }
0x1094   :  { %v1632_v52 = vsel %vm718_vm13, %v1630_v36, %v1618_v39 }
0x1095   :  { %v1616_v47 = vpop.permute.xlu0 %1615 }
0x1096   :  { %v1631_v50 = vsel %vm718_vm13, %v1629_v48, %v1616_v47  ;;  %v2480_v48 = vld [vmem:[#allocation2 + $0x238] ss:$0 sm:$0xff] }
0x1097   :  { %v1626_v49 = vpop.permute.xlu1 %1625 }
0x1098   :  { %v1634_v55 = vsel %vm721_vm14, %v1632_v52, %v1626_v49 }
0x1099   :  { %v1624_v51 = vpop.permute.xlu0 %1623 }
0x109a   :  { %v1633_v54 = vsel %vm721_vm14, %v1631_v50, %v1624_v51 }
0x109b   :  { %2871 = vmatprep.mubr.msk.f32.mxu1 %vm178_vm2, %v1633_v54 }
0x109c   :  { %2872 = vmatmul.mubr.msk.f32.vlgmr.msra.gmra.mxu1 %vm178_vm2, %v1634_v55 }
0x115c   :  { %v2873_v41 = vpop.f32.mrf.mxu1 }
0x115d   :  { %v1722_v42 = vadd.f32 %v2873_v41, %v2472_v40 }
0x115e   :  { %v1716_v43 = vpop.f32.mrf.mxu1 }
0x115f   :  { %v1726_v38 = vadd.f32 %v1722_v42, %v3363_v10  ;;  %v1717_v56 = vadd.f32 %v2472_v40, %v1716_v43 }
0x1161   :  { %v1725_v57 = vadd.f32 %v1717_v56, %v3361_v9  ;;  %v1732_v58 = vsel %vm178_vm2, %v1726_v38, 0.0  ;;  %v1770_v9 = vld [vmem:[#allocation2 + $0x1e8] sm:$0xff] }
0x1162   :  { %1733 = vadd.xlane.f32.xlu1 %v1732_v58  ;;  %2874 = vmatprep.subr.mxu1 %v1770_v9 }
0x1163   :  { %v1729_v33 = vsel %vm178_vm2, %v1725_v57, 0.0  ;;  %2875 = vmatpush3.msra.mxu1 %v1770_v9 }
0x1164   :  { %1730 = vadd.xlane.f32.xlu0 %v1729_v33  ;;  %2876 = vmatprep.subr.mxu1 %v1769_v1 }
0x1165   :  { %2877 = vmatpush3.msra.mxu1 %v1769_v1 }
0x1166   :  { %2878 = vmatprep.subr.mxu1 %v1768_v22 }
0x1167   :  { %2879 = vmatpush3.msra.mxu1 %v1768_v22 }
0x1168   :  { %2880 = vmatprep.subr.mxu1 %v1767_v16 }
0x1169   :  { %2881 = vmatpush3.msra.mxu1 %v1767_v16  ;;  %v2483_v16 = vld [vmem:[#allocation2 + $0x240] ss:$0 sm:$0xff] }
0x11eb   :  { %v1734_v59 = vpop.xlane.xlu1 %1733 }
0x11ec   :  { %v1736_v14 = vmul.f32 0.03125, %v1734_v59 }
0x11ed   :  { %v1731_v32 = vpop.xlane.xlu0 %1730 }
0x11ee   :  { %v1735_v60 = vmul.f32 0.03125, %v1731_v32  ;;  %v1738_v61 = vsub.f32 %v1726_v38, %v1736_v14  ;;  %v1998_v32 = vld [vmem:[#allocation2 + $0x268] sm:$0xff] }
0x11ef   :  { %2904 = vmatprep.subr.mxu1 %v1998_v32 }
0x11f0   :  { %v1737_v62 = vsub.f32 %v1725_v57, %v1735_v60  ;;  %v1740_v20 = vmul.f32 %v1738_v61, %v1738_v61  ;;  %v1997_v60 = vld [vmem:[#allocation2 + $0x260] sm:$0xff] }
0x11f2   :  { %v1739_v63 = vmul.f32 %v1737_v62, %v1737_v62  ;;  %v1744_v10 = vsel %vm178_vm2, %v1740_v20, 0.0 }
0x11f4   :  { %v1741_v0 = vsel %vm178_vm2, %v1739_v63, 0.0 }
0x11f5   :  { %1742 = vadd.xlane.f32.xlu0 %v1741_v0 }
0x11f9   :  { %1745 = vadd.xlane.f32.xlu0 %v1744_v10 }
0x127e   :  { %v1743_v3 = vpop.xlane.xlu0 %1742 }
0x127f   :  { %v1747_v45 = vmul.f32 0.03125, %v1743_v3 }
0x1281   :  { %v1749_v4 = vadd.f32 1e-05, %v1747_v45 }
0x1282   :  { %v1746_v5 = vpop.xlane.xlu0 %1745 }
0x1283   :  { %3031 = vrsqrt.f32 %v1749_v4  ;;  %v1748_v6 = vmul.f32 0.03125, %v1746_v5  ;;  %v2485_v5 = vld [vmem:[#allocation2 + $0x270] ss:$0 sm:$0xff] }
0x1285   :  { %v1750_v53 = vadd.f32 1e-05, %v1748_v6 }
0x1287   :  { %3033 = vrsqrt.f32 %v1750_v53 }
0x1290   :  { %v3032_v8 = vpop.eup %3031 }
0x1291   :  { %v1753_v13 = vmul.f32 %v3032_v8, %v1737_v62  ;;  %v1995_v62 = vld [vmem:[#allocation2 + $0x250] sm:$0xff] }
0x1293   :  { %v1759_v17 = vmul.f32 %v2475_v12, %v1753_v13 }
0x1294   :  { %v3034_v18 = vpop.eup %3033 }
0x1295   :  { %v1754_v19 = vmul.f32 %v3034_v18, %v1738_v61  ;;  %v1765_v21 = vadd.f32 %v2476_v15, %v1759_v17  ;;  %v1996_v61 = vld [vmem:[#allocation2 + $0x258] sm:$0xff] }
0x1297   :  { %v1760_v23 = vmul.f32 %v2475_v12, %v1754_v19  ;;  %2882 = vmatprep.mubr.msk.f32.mxu1 %vm178_vm2, %v1765_v21 }
0x1299   :  { %v1766_v24 = vadd.f32 %v2476_v15, %v1760_v23 }
0x129b   :  { %2883 = vmatmul.mubr.msk.f32.vlgmr.msra.gmra.mxu1 %vm178_vm2, %v1766_v24 }
0x129c   :  { %2905 = vmatpush3.msra.mxu1 %v1998_v32 }
0x129d   :  { %2906 = vmatprep.subr.mxu1 %v1997_v60 }
0x129e   :  { %2907 = vmatpush3.msra.mxu1 %v1997_v60 }
0x129f   :  { %2908 = vmatprep.subr.mxu1 %v1996_v61 }
0x12a0   :  { %2909 = vmatpush3.msra.mxu1 %v1996_v61 }
0x12a1   :  { %2910 = vmatprep.subr.mxu1 %v1995_v62 }
0x12a2   :  { %2911 = vmatpush3.msra.mxu1 %v1995_v62 }
0x135b   :  { %v2884_v31 = vpop.f32.mrf.mxu1 }
0x135c   :  { %v1854_v34 = vadd.f32 %v2884_v31, %v2477_v29 }
0x135d   :  { %v1848_v35 = vpop.f32.mrf.mxu1 }
0x135e   :  { %v1849_v37 = vadd.f32 %v2477_v29, %v1848_v35  ;;  %v1858_v47 = vmax.f32 %v1854_v34, 0.0 }
0x1360   :  { %v1857_v39 = vmax.f32 %v1849_v37, 0.0 }
0x1362   :  { %2901 = vmatprep.mubr.msk.f32.mxu0 %vm450_vm6, %v1857_v39 }
0x1363   :  { %2902 = vmatmul.mubr.msk.f32.vlgmr.msra.gmra.mxu0 %vm450_vm6, %v1858_v47 }
0x1423   :  { %v2903_v49 = vpop.f32.mrf.mxu0 }
0x1424   :  { %v1950_v36 = vadd.f32 %v2903_v49, %v2480_v48 }
0x1425   :  { %v1944_v50 = vpop.f32.mrf.mxu0 }
0x1426   :  { %v1954_v51 = vadd.f32 %v1950_v36, %v1766_v24  ;;  %v1945_v52 = vadd.f32 %v2480_v48, %v1944_v50 }
0x1428   :  { %v1953_v54 = vadd.f32 %v1945_v52, %v1765_v21  ;;  %v1960_v55 = vsel %vm178_vm2, %v1954_v51, 0.0 }
0x1429   :  { %1961 = vadd.xlane.f32.xlu0 %v1960_v55 }
0x142a   :  { %v1957_v40 = vsel %vm178_vm2, %v1953_v54, 0.0 }
0x142b   :  { %1958 = vadd.xlane.f32.xlu1 %v1957_v40  ;;  %v3106_v40 = vmov 0.0  }
0x14b2   :  { %v1962_v41 = vpop.xlane.xlu0 %1961 }
0x14b3   :  { %v1964_v42 = vmul.f32 0.03125, %v1962_v41  ;;  %v2306_v41 = vld [vmem:[#allocation2 + $0x290] sm:$0xff] }
0x14b4   :  { %v1959_v43 = vpop.xlane.xlu1 %1958 }
0x14b5   :  { %v1966_v38 = vsub.f32 %v1954_v51, %v1964_v42  ;;  %v1963_v56 = vmul.f32 0.03125, %v1959_v43  ;;  %v2305_v42 = vld [vmem:[#allocation2 + $0x288] sm:$0xff]  ;;  %v2304_v43 = vld [vmem:[#allocation2 + $0x280] sm:$0xff] }
0x14b7   :  { %v1965_v57 = vsub.f32 %v1953_v54, %v1963_v56  ;;  %v1968_v58 = vmul.f32 %v1966_v38, %v1966_v38 }
0x14b9   :  { %v1972_v33 = vsel %vm178_vm2, %v1968_v58, 0.0  ;;  %v1967_v59 = vmul.f32 %v1965_v57, %v1965_v57 }
0x14ba   :  { %1973 = vadd.xlane.f32.xlu0 %v1972_v33 }
0x14bb   :  { %v1969_v14 = vsel %vm178_vm2, %v1967_v59, 0.0 }
0x14bc   :  { %1970 = vadd.xlane.f32.xlu1 %v1969_v14 }
0x1543   :  { %v1974_v63 = vpop.xlane.xlu0 %1973 }
0x1544   :  { %v1976_v0 = vmul.f32 0.03125, %v1974_v63 }
0x1545   :  { %v1971_v20 = vpop.xlane.xlu1 %1970 }
0x1546   :  { %v1978_v10 = vadd.f32 1e-05, %v1976_v0  ;;  %v1975_v9 = vmul.f32 0.03125, %v1971_v20 }
0x1548   :  { %3035 = vrsqrt.f32 %v1978_v10  ;;  %v1977_v1 = vadd.f32 1e-05, %v1975_v9 }
0x154a   :  { %3037 = vrsqrt.f32 %v1977_v1 }
0x1555   :  { %v3036_v22 = vpop.eup %3035 }
0x1556   :  { %v1982_v27 = vmul.f32 %v3036_v22, %v1966_v38  ;;  %v2303_v38 = vld [vmem:[#allocation2 + $0x278] sm:$0xff] }
0x1557   :  { %v3038_v30 = vpop.eup %3037 }
0x1558   :  { %v1981_v46 = vmul.f32 %v3038_v30, %v1965_v57  ;;  %v1988_v44 = vmul.f32 %v2483_v16, %v1982_v27 }
0x155a   :  { %v1987_v3 = vmul.f32 %v2483_v16, %v1981_v46  ;;  %v1994_v4 = vadd.f32 %v2484_v2, %v1988_v44  ;;  %v2494_v16 = vld [vmem:[#allocation2 + $0x298] ss:$0 sm:$0xff] }
0x155c   :  { %v1993_v45 = vadd.f32 %v2484_v2, %v1987_v3 }
0x155e   :  { %2912 = vmatprep.mubr.msk.f32.mxu1 %vm178_vm2, %v1993_v45 }
0x155f   :  { %2913 = vmatmul.mubr.msk.f32.vlgmr.msra.gmra.mxu1 %vm178_vm2, %v1994_v4 }
0x161f   :  { %v2914_v6 = vpop.f32.mrf.mxu1 }
0x1620   :  { %v2082_v53 = vadd.f32 %v2914_v6, %v2485_v5 }
0x1621   :  { %v2076_v8 = vpop.f32.mrf.mxu1 }
0x1622   :  { %v2077_v12 = vadd.f32 %v2485_v5, %v2076_v8  ;;  %2091 = vrot.lane.b32.xlu1 %v2082_v53, %s3104_s25  ;;  %v2086_v18 = vmul.f32 0.17677669, %v2082_v53 }
0x1624   :  { %v2085_v13 = vmul.f32 0.17677669, %v2077_v12  ;;  %2089 = vrot.lane.b32.xlu0 %v2077_v12, %s3104_s25 }
0x1626   :  { %2919 = vmatprep.mubr.msk.f32.mxu0 %vm178_vm2, %v2085_v13 }
0x1694   :  { %v2092_v15 = vpop.permute.xlu1 %2091 }
0x1695   :  { %2915 = vmatprep.subr.msk.mxu0 %vm178_vm2, %v2092_v15 }
0x1696   :  { %2916 = vmatpush3.xpose.msk.msra.mxu0 %vm178_vm2, %v2092_v15  ;;  %v2090_v17 = vpop.permute.xlu0 %2089 }
0x1697   :  { %2917 = vmatprep.subr.msk.mxu0 %vm178_vm2, %v2090_v17 }
0x169a   :  { %2918 = vmatpush3.xpose.msk.msra.mxu0 %vm178_vm2, %v2090_v17 }
0x169d   :  { %2920 = vmatmul.mubr.msk.f32.vlgmr.msra.gmra.mxu0 %vm178_vm2, %v2086_v18 }
0x175d   :  { %v2921_v19 = vpop.f32.mrf.mxu0 }
0x175e   :  { %v2175_v21 = vadd.f32 %v2921_v19, %v3236_v7 }
0x175f   :  { %v2169_v23 = vpop.f32.mrf.mxu0 }
0x1760   :  { %v2170_v24 = vadd.f32 %v2169_v23, %v3239_v11  ;;  %v2181_v25 = vsel %vm718_vm13, %v2175_v21, -inf }
0x1761   :  { %2182 = vmax.xlane.f32.xlu0 %v2181_v25 }
0x1762   :  { %v2178_v26 = vsel %vm718_vm13, %v2170_v24, -inf }
0x1763   :  { %2179 = vmax.xlane.f32.xlu1 %v2178_v26 }
0x17ea   :  { %v2183_v28 = vpop.xlane.xlu0 %2182 }
0x17eb   :  { %v2185_v29 = vsub.f32 %v2175_v21, %v2183_v28 }
0x17ec   :  { %v2180_v31 = vpop.xlane.xlu1 %2179 }
0x17ed   :  { %v2188_v34 = vmul.f32 1.442695, %v2185_v29  ;;  %v2184_v35 = vsub.f32 %v2170_v24, %v2180_v31 }
0x17ef   :  { %3039 = vpow2.f32 %v2188_v34  ;;  %v2186_v37 = vmul.f32 1.442695, %v2184_v35 }
0x17f1   :  { %3041 = vpow2.f32 %v2186_v37 }
0x17fc   :  { %v3040_v39 = vpop.eup %3039 }
0x17fd   :  { %v2193_v7 = vsel %vm718_vm13, %v3040_v39, 0.0 }
0x17fe   :  { %v3042_v47 = vpop.eup %3041  ;;  %2194 = vadd.xlane.f32.xlu0 %v2193_v7 }
0x17ff   :  { %v2190_v11 = vsel %vm718_vm13, %v3042_v47, 0.0 }
0x1800   :  { %2191 = vadd.xlane.f32.xlu1 %v2190_v11 }
0x1811   :  { %2202 = vrot.lane.b32.xlu1 %v2082_v53, %s3105_s26 }
0x1814   :  { %2200 = vrot.lane.b32.xlu0 %v2077_v12, %s3105_s26 }
0x1887   :  { %v2195_v48 = vpop.xlane.xlu0 %2194 }
0x1888   :  { %3043 = vrcp.f32 %v2195_v48 }
0x1889   :  { %v2192_v49 = vpop.xlane.xlu1 %2191 }
0x188a   :  { %3045 = vrcp.f32 %v2192_v49 }
0x188b   :  { %v2201_v50 = vpop.permute.xlu0 %2200 }
0x188d   :  { %v2203_v36 = vpop.permute.xlu1 %2202 }
0x188e   :  { %2922 = vmatprep.subr.mxu1 %v2203_v36 }
0x188f   :  { %2923 = vmatpush3.msra.mxu1 %v2203_v36 }
0x1890   :  { %2924 = vmatprep.subr.mxu1 %v2201_v50 }
0x1891   :  { %2925 = vmatpush3.msra.mxu1 %v2201_v50 }
0x1892   :  { %2929 = vmatprep.subr.mxu1 %v3106_v40 }
0x1895   :  { %v3044_v51 = vpop.eup %3043 }
0x1896   :  { %v2199_v55 = vmul.f32 %v3044_v51, %v3040_v39 }
0x1897   :  { %v3046_v52 = vpop.eup %3045 }
0x1898   :  { %v2198_v54 = vmul.f32 %v3046_v52, %v3042_v47 }
0x189a   :  { %2926 = vmatprep.mubr.msk.f32.mxu1 %vm718_vm13, %v2198_v54 }
0x189b   :  { %2927 = vmatmul.mubr.msk.f32.vlgmr.msra.gmra.mxu1 %vm718_vm13, %v2199_v55 }
0x189c   :  { %2930 = vmatpush3.msra.mxu1 %v2306_v41  ;;  %2937 = vmatprep.mubr.msk.f32.mxu1 %vm3107_vm15, %v3106_v40 }
0x189d   :  { %2931 = vmatprep.subr.mxu1 %v3106_v40 }
0x189e   :  { %2932 = vmatpush3.msra.mxu1 %v2305_v42 }
0x189f   :  { %2933 = vmatprep.subr.mxu1 %v3106_v40 }
0x18a0   :  { %2934 = vmatpush3.msra.mxu1 %v2304_v43 }
0x18a1   :  { %2935 = vmatprep.subr.mxu1 %v3106_v40 }
0x18a2   :  { %2936 = vmatpush3.msra.mxu1 %v2303_v38 }
0x195b   :  { %v2928_v56 = vpop.f32.mrf.mxu1 }
0x195c   :  { %v2294_v57 = vsel %vm178_vm2, %v2928_v56, -inf }
0x195d   :  { %v2295_v58 = vrot.slane %v2294_v57, 4  ;;  %v2278_v33 = vpop.f32.mrf.mxu1 }
0x195e   :  { %v2287_v59 = vsel %vm178_vm2, %v2278_v33, -inf }
0x195f   :  { %v2296_v14 = vmax.f32 %v2294_v57, %v2295_v58  ;;  %v2288_v32 = vrot.slane %v2287_v59, 4 }
0x1961   :  { %v2297_v60 = vrot.slane %v2296_v14, 2  ;;  %v2289_v61 = vmax.f32 %v2287_v59, %v2288_v32 }
0x1963   :  { %v2298_v62 = vmax.f32 %v2296_v14, %v2297_v60  ;;  %v2290_v63 = vrot.slane %v2289_v61, 2 }
0x1965   :  { %v2299_v0 = vrot.slane %v2298_v62, 1  ;;  %v2291_v20 = vmax.f32 %v2289_v61, %v2290_v63 }
0x1967   :  { %v2292_v10 = vrot.slane %v2291_v20, 1  ;;  %v2300_v9 = vmax.f32 %v2298_v62, %v2299_v0 }
0x1969   :  { %v2293_v1 = vmax.f32 %v2291_v20, %v2292_v10 }
0x196b   :  { %v2302_v22 = vsel %vm2301_vm0, %v2293_v1, %v2300_v9 }
0x196c   :  { %2938 = vmatmul.mubr.msk.f32.vlgmr.msra.gmra.mxu1 %vm178_vm2, %v2302_v22 }
0x1a2c   :  { %v2381_v27 = vpop.f32.mrf.mxu1 }
0x1a2d   :  { %v2382_v30 = vadd.f32 %v2494_v16, %v2381_v27 }
0x1a2e   :  { %v2939_v46 = vpop.f32.mrf.mxu1 }
0x1a2f   :  { %2385 = vst [vmem:[#allocation5] sm:$0x3] %v2382_v30 }
0x1a30   :  { %3078 = shalt.err (!%p3075_p9)
}
0x1a31   :  { %2395 = dma.vmem_to_hbm [thread:$0]  %s2393_s28, 32, %s3569_s2, [#allocation4]  }
0x1a32   :  { %3089 = dma.done.wait [#allocation4], 32  }
0x1a33   :  { %3090 = vsyncadd [#allocation4], 4294967264 }
0x1a34   :  { %2399 = vsyncpa [#allocation3], 1 }
0x1a35   :  { %2400 = vsyncpa [#allocation4], 1 }

</bundles_post_ra>
